<compile_context>
chip_gen: v5e
topology: v5e:2x2
jax: 0.10.0
libtpu: 0.0.40
codegen_flags: <defaults>
</compile_context>

<pallas_src>
import functools

import jax
import jax.numpy as jnp
from jax.experimental import pallas as pl
from jax.experimental.pallas import tpu as pltpu

LANE = 128


def _round_up(n, m):
    return ((n + m - 1) // m) * m


def ae_kernel(
    x_ref,
    w_e1, b_e1, w_e2, b_e2, w_e3, b_e3,
    w_z, b_z,
    w_d1, b_d1, w_d2, b_d2, w_d3, b_d3,
    w_xb, b_xb,
    xbar_ref, h1_ref, h2_ref, h3_ref, z_ref,
):
    """Fused 8-layer MLP on one batch tile (bf16 MXU, f32 accumulate)."""

    def lin(a_bf16, w_r, b_r, relu):
        y = jnp.dot(a_bf16, w_r[...], preferred_element_type=jnp.float32)
        y = y + b_r[...]
        if relu:
            y = jnp.maximum(y, 0.0)
        return y

    # Store each required output right after it is computed (short live ranges).
    h1 = lin(x_ref[...], w_e1, b_e1, True)
    h1_ref[...] = h1.astype(h1_ref.dtype)

    h2 = lin(h1.astype(jnp.bfloat16), w_e2, b_e2, True)
    h2_ref[...] = h2.astype(h2_ref.dtype)

    h3 = lin(h2.astype(jnp.bfloat16), w_e3, b_e3, True)
    h3_ref[...] = h3.astype(h3_ref.dtype)

    z = lin(h3.astype(jnp.bfloat16), w_z, b_z, False)
    z_ref[...] = z.astype(z_ref.dtype)

    d1 = lin(z.astype(jnp.bfloat16), w_d1, b_d1, True)
    d2 = lin(d1.astype(jnp.bfloat16), w_d2, b_d2, True)
    d3 = lin(d2.astype(jnp.bfloat16), w_d3, b_d3, True)
    x_bar = lin(d3.astype(jnp.bfloat16), w_xb, b_xb, False)
    xbar_ref[...] = x_bar.astype(xbar_ref.dtype)


def _build_call(tb, Bp, dims_out, out_dtypes, padded_params, flops,
                bytes_accessed, vmem_limit):
    grid = (Bp // tb,)
    n_in_p = dims_out[0]

    in_specs = [pl.BlockSpec((tb, n_in_p), lambda i: (i, 0))]
    for w, b in padded_params:
        # Grid-invariant weight/bias blocks: same tile every step.
        in_specs.append(pl.BlockSpec(w.shape, lambda i: (0, 0)))
        in_specs.append(pl.BlockSpec(b.shape, lambda i: (0, 0)))

    out_specs = [pl.BlockSpec((tb, d), lambda i: (i, 0)) for d in dims_out]
    out_shape = tuple(jax.ShapeDtypeStruct((Bp, d), dt)
                      for d, dt in zip(dims_out, out_dtypes))

    return pl.pallas_call(
        ae_kernel,
        out_shape=out_shape,
        grid_spec=pltpu.PrefetchScalarGridSpec(
            num_scalar_prefetch=0,
            grid=grid,
            in_specs=in_specs,
            out_specs=out_specs,
        ),
        compiler_params=pltpu.CompilerParams(
            dimension_semantics=("parallel",),
            vmem_limit_bytes=vmem_limit,
        ),
        cost_estimate=pl.CostEstimate(
            flops=flops, transcendentals=0, bytes_accessed=bytes_accessed),
    )


@functools.partial(jax.jit, static_argnames=("tb",))
def ae_forward(x, params, tb=512):
    """params: list of 8 (W, b) pairs, W shape [in, out], b shape [1, out].

    Returns (x_bar, enc_h1, enc_h2, enc_h3, z) like the PyTorch AE.
    x_bar and z are float32; enc_h1/h2/h3 are bfloat16 (writeback saving).
    """
    B, n_input = x.shape

    # Batch tile: multiple of 16 (bf16 sublane packing), capped so the grid
    # keeps >= 2 steps whenever possible (both v7x TensorCores get work).
    tb = max(16, min(int(tb), 512))
    tb = _round_up(tb, 16)
    tb = min(tb, max(16, _round_up(max(B // 2, 1), 16)))
    Bp = _round_up(B, tb)

    # Zero-pad every feature dim to a 128-lane multiple; cast weights and the
    # input to bf16 (these pads/casts are inside jit, so they fuse & cache).
    n_in_p = _round_up(n_input, LANE)
    padded_params = []
    for (w, b) in params:
        fi, fo = w.shape
        fip, fop = _round_up(fi, LANE), _round_up(fo, LANE)
        wp = jnp.pad(w, ((0, fip - fi), (0, fop - fo))).astype(jnp.bfloat16)
        bp = jnp.pad(b.reshape(1, -1).astype(jnp.float32),
                     ((0, 0), (0, fop - fo)))
        padded_params.append((wp, bp))

    xp = jnp.pad(x, ((0, Bp - B), (0, n_in_p - n_input))).astype(jnp.bfloat16)

    dims_out = (
        n_in_p,                              # x_bar
        padded_params[0][0].shape[1],        # h1
        padded_params[1][0].shape[1],        # h2
        padded_params[2][0].shape[1],        # h3
        padded_params[3][0].shape[1],        # z
    )
    out_dtypes = (jnp.float32, jnp.bfloat16, jnp.bfloat16, jnp.bfloat16,
                  jnp.float32)
    out_itemsize = [jnp.dtype(dt).itemsize for dt in out_dtypes]

    flops = 2 * Bp * sum(int(w.shape[0]) * int(w.shape[1])
                         for w, _ in padded_params)
    bytes_accessed = (
        int(xp.size) * 2
        + sum(int(w.size) * 2 + int(b.size) * 4 for w, b in padded_params)
        + Bp * sum(d * s for d, s in zip(dims_out, out_itemsize))
    )

    # Honest VMEM budget: double-buffered tiles + weights + live activations
    # + headroom for Mosaic internal scratch.
    vmem = 2 * tb * n_in_p * 2
    vmem += sum(2 * tb * d * s for d, s in zip(dims_out, out_itemsize))
    vmem += sum(2 * (int(w.size) * 2 + int(b.size) * 4)
                for w, b in padded_params)
    vmem += 8 * tb * LANE * 4
    vmem += 4 * 1024 * 1024
    vmem_limit = min(_round_up(vmem, 1024 * 1024), 64 * 1024 * 1024)

    flat_args = [xp]
    for w, b in padded_params:
        flat_args.extend([w, b])

    call = _build_call(tb, Bp, dims_out, out_dtypes, padded_params, flops,
                       bytes_accessed, vmem_limit)
    x_bar_p, h1_p, h2_p, h3_p, z_p = call(*flat_args)

    n_e1 = params[0][0].shape[1]
    n_e2 = params[1][0].shape[1]
    n_e3 = params[2][0].shape[1]
    n_z = params[3][0].shape[1]
    return (
        x_bar_p[:B, :n_input],
        h1_p[:B, :n_e1],
        h2_p[:B, :n_e2],
        h3_p[:B, :n_e3],
        z_p[:B, :n_z],
    )


def init_params(key, n_enc_1, n_enc_2, n_enc_3, n_dec_1, n_dec_2, n_dec_3,
                n_input, n_z):
    dims = [
        (n_input, n_enc_1),
        (n_enc_1, n_enc_2),
        (n_enc_2, n_enc_3),
        (n_enc_3, n_z),
        (n_z, n_dec_1),
        (n_dec_1, n_dec_2),
        (n_dec_2, n_dec_3),
        (n_dec_3, n_input),
    ]
    params = []
    for (fan_in, fan_out) in dims:
        key, kw, kb = jax.random.split(key, 3)
        bound = 1.0 / (fan_in ** 0.5)  # PyTorch Linear default uniform bound
        w = jax.random.uniform(kw, (fan_in, fan_out), jnp.float32, -bound, bound)
        b = jax.random.uniform(kb, (1, fan_out), jnp.float32, -bound, bound)
        params.append((w, b))
    return params


def ae_reference(x, params):
    def lin(a, w, b, relu):
        y = a @ w + b
        return jnp.maximum(y, 0.0) if relu else y
    h1 = lin(x, *params[0], True)
    h2 = lin(h1, *params[1], True)
    h3 = lin(h2, *params[2], True)
    z = lin(h3, *params[3], False)
    d1 = lin(z, *params[4], True)
    d2 = lin(d1, *params[5], True)
    d3 = lin(d2, *params[6], True)
    x_bar = lin(d3, *params[7], False)
    return x_bar, h1, h2, h3, z


if __name__ == "__main__":
    # Non-128-multiple feature dims exercise the padding path; B=512 with the
    # >=2-grid-step clamp gives tb=256 (two steps -> both v7x TensorCores).
    n_input, n_z = 48, 10
    n_enc_1, n_enc_2, n_enc_3 = 64, 64, 96
    n_dec_1, n_dec_2, n_dec_3 = 96, 64, 64
    B = 512

    key = jax.random.PRNGKey(0)
    kx, kp = jax.random.split(key)
    x = jax.random.normal(kx, (B, n_input), jnp.float32)
    params = init_params(kp, n_enc_1, n_enc_2, n_enc_3,
                         n_dec_1, n_dec_2, n_dec_3, n_input, n_z)

    outs = ae_forward(x, params, tb=512)
    outs = jax.block_until_ready(outs)

    refs = ae_reference(x, params)
    names = ("x_bar", "enc_h1", "enc_h2", "enc_h3", "z")
    for name, o, r in zip(names, outs, refs):
        assert o.shape == r.shape, (name, o.shape, r.shape)
        o32 = jnp.asarray(o, jnp.float32)
        max_err = float(jnp.max(jnp.abs(o32 - r)))
        # bf16 matmul operands / bf16 hidden stores -> looser tolerance.
        assert jnp.allclose(o32, r, atol=5e-2, rtol=5e-2), (name, max_err)

    print("KERNEL_OK")
</pallas_src>

<mosaic_0001>
module attributes {stable_mosaic.version = 11 : i64} {
  func.func @ae_kernel(%arg0: i32, %arg1: memref<256x128xbf16, #tpu.memory_space<vmem>>, %arg2: memref<128x128xbf16, #tpu.memory_space<vmem>>, %arg3: memref<1x128xf32, #tpu.memory_space<vmem>>, %arg4: memref<128x128xbf16, #tpu.memory_space<vmem>>, %arg5: memref<1x128xf32, #tpu.memory_space<vmem>>, %arg6: memref<128x128xbf16, #tpu.memory_space<vmem>>, %arg7: memref<1x128xf32, #tpu.memory_space<vmem>>, %arg8: memref<128x128xbf16, #tpu.memory_space<vmem>>, %arg9: memref<1x128xf32, #tpu.memory_space<vmem>>, %arg10: memref<128x128xbf16, #tpu.memory_space<vmem>>, %arg11: memref<1x128xf32, #tpu.memory_space<vmem>>, %arg12: memref<128x128xbf16, #tpu.memory_space<vmem>>, %arg13: memref<1x128xf32, #tpu.memory_space<vmem>>, %arg14: memref<128x128xbf16, #tpu.memory_space<vmem>>, %arg15: memref<1x128xf32, #tpu.memory_space<vmem>>, %arg16: memref<128x128xbf16, #tpu.memory_space<vmem>>, %arg17: memref<1x128xf32, #tpu.memory_space<vmem>>, %arg18: memref<256x128xf32, #tpu.memory_space<vmem>>, %arg19: memref<256x128xbf16, #tpu.memory_space<vmem>>, %arg20: memref<256x128xbf16, #tpu.memory_space<vmem>>, %arg21: memref<256x128xbf16, #tpu.memory_space<vmem>>, %arg22: memref<256x128xf32, #tpu.memory_space<vmem>>) attributes {dimension_semantics = [#tpu.dimension_semantics<parallel>], iteration_bounds = array<i64: 2>, scalar_prefetch = 0 : i64, scratch_operands = 0 : i64, tpu.core_type = #tpu.core_type<tc>, window_params = [{transform_indices = @transform_0, window_bounds = array<i64: 256, 128>}, {pipeline_mode = #tpu.pipeline_mode<synchronous>, transform_indices = @transform_1, window_bounds = array<i64: 128, 128>}, {pipeline_mode = #tpu.pipeline_mode<synchronous>, transform_indices = @transform_2, window_bounds = array<i64: 1, 128>}, {pipeline_mode = #tpu.pipeline_mode<synchronous>, transform_indices = @transform_3, window_bounds = array<i64: 128, 128>}, {pipeline_mode = #tpu.pipeline_mode<synchronous>, transform_indices = @transform_4, window_bounds = array<i64: 1, 128>}, {pipeline_mode = #tpu.pipeline_mode<synchronous>, transform_indices = @transform_5, window_bounds = array<i64: 128, 128>}, {pipeline_mode = #tpu.pipeline_mode<synchronous>, transform_indices = @transform_6, window_bounds = array<i64: 1, 128>}, {pipeline_mode = #tpu.pipeline_mode<synchronous>, transform_indices = @transform_7, window_bounds = array<i64: 128, 128>}, {pipeline_mode = #tpu.pipeline_mode<synchronous>, transform_indices = @transform_8, window_bounds = array<i64: 1, 128>}, {pipeline_mode = #tpu.pipeline_mode<synchronous>, transform_indices = @transform_9, window_bounds = array<i64: 128, 128>}, {pipeline_mode = #tpu.pipeline_mode<synchronous>, transform_indices = @transform_10, window_bounds = array<i64: 1, 128>}, {pipeline_mode = #tpu.pipeline_mode<synchronous>, transform_indices = @transform_11, window_bounds = array<i64: 128, 128>}, {pipeline_mode = #tpu.pipeline_mode<synchronous>, transform_indices = @transform_12, window_bounds = array<i64: 1, 128>}, {pipeline_mode = #tpu.pipeline_mode<synchronous>, transform_indices = @transform_13, window_bounds = array<i64: 128, 128>}, {pipeline_mode = #tpu.pipeline_mode<synchronous>, transform_indices = @transform_14, window_bounds = array<i64: 1, 128>}, {pipeline_mode = #tpu.pipeline_mode<synchronous>, transform_indices = @transform_15, window_bounds = array<i64: 128, 128>}, {pipeline_mode = #tpu.pipeline_mode<synchronous>, transform_indices = @transform_16, window_bounds = array<i64: 1, 128>}, {transform_indices = @transform_17, window_bounds = array<i64: 256, 128>}, {transform_indices = @transform_18, window_bounds = array<i64: 256, 128>}, {transform_indices = @transform_19, window_bounds = array<i64: 256, 128>}, {transform_indices = @transform_20, window_bounds = array<i64: 256, 128>}, {transform_indices = @transform_21, window_bounds = array<i64: 256, 128>}]} {
    %c0 = arith.constant 0 : index
    %c0_0 = arith.constant 0 : index
    %0 = vector.load %arg1[%c0, %c0_0] : memref<256x128xbf16, #tpu.memory_space<vmem>>, vector<256x128xbf16>
    %c0_1 = arith.constant 0 : index
    %c0_2 = arith.constant 0 : index
    %1 = vector.load %arg2[%c0_1, %c0_2] : memref<128x128xbf16, #tpu.memory_space<vmem>>, vector<128x128xbf16>
    %cst = arith.constant dense<0.000000e+00> : vector<256x128xf32>
    %2 = tpu.matmul %0, %1, %cst {dimension_numbers = #tpu.dot_dimension_numbers<[1], [0], [0], [1], [0, 0, 1, 1], [], []>} : vector<256x128xbf16>, vector<128x128xbf16>, vector<256x128xf32> -> vector<256x128xf32>
    %c0_3 = arith.constant 0 : index
    %c0_4 = arith.constant 0 : index
    %3 = vector.load %arg3[%c0_3, %c0_4] : memref<1x128xf32, #tpu.memory_space<vmem>>, vector<1x128xf32>
    %4 = vector.broadcast %3 : vector<1x128xf32> to vector<256x128xf32>
    %5 = arith.addf %2, %4 : vector<256x128xf32>
    %cst_5 = arith.constant 0.000000e+00 : f32
    %6 = vector.broadcast %cst_5 : f32 to vector<256x128xf32>
    %7 = arith.maximumf %5, %6 : vector<256x128xf32>
    %8 = arith.truncf %7 : vector<256x128xf32> to vector<256x128xbf16>
    %c0_6 = arith.constant 0 : index
    %c0_7 = arith.constant 0 : index
    %9 = vector.load %arg19[%c0_6, %c0_7] : memref<256x128xbf16, #tpu.memory_space<vmem>>, vector<256x128xbf16>
    tpu.vector_store %arg19[%c0_6, %c0_7], %8 {strides = array<i32>} : memref<256x128xbf16, #tpu.memory_space<vmem>>, vector<256x128xbf16>,
    %10 = arith.truncf %7 : vector<256x128xf32> to vector<256x128xbf16>
    %c0_8 = arith.constant 0 : index
    %c0_9 = arith.constant 0 : index
    %11 = vector.load %arg4[%c0_8, %c0_9] : memref<128x128xbf16, #tpu.memory_space<vmem>>, vector<128x128xbf16>
    %cst_10 = arith.constant dense<0.000000e+00> : vector<256x128xf32>
    %12 = tpu.matmul %10, %11, %cst_10 {dimension_numbers = #tpu.dot_dimension_numbers<[1], [0], [0], [1], [0, 0, 1, 1], [], []>} : vector<256x128xbf16>, vector<128x128xbf16>, vector<256x128xf32> -> vector<256x128xf32>
    %c0_11 = arith.constant 0 : index
    %c0_12 = arith.constant 0 : index
    %13 = vector.load %arg5[%c0_11, %c0_12] : memref<1x128xf32, #tpu.memory_space<vmem>>, vector<1x128xf32>
    %14 = vector.broadcast %13 : vector<1x128xf32> to vector<256x128xf32>
    %15 = arith.addf %12, %14 : vector<256x128xf32>
    %cst_13 = arith.constant 0.000000e+00 : f32
    %16 = vector.broadcast %cst_13 : f32 to vector<256x128xf32>
    %17 = arith.maximumf %15, %16 : vector<256x128xf32>
    %18 = arith.truncf %17 : vector<256x128xf32> to vector<256x128xbf16>
    %c0_14 = arith.constant 0 : index
    %c0_15 = arith.constant 0 : index
    %19 = vector.load %arg20[%c0_14, %c0_15] : memref<256x128xbf16, #tpu.memory_space<vmem>>, vector<256x128xbf16>
    tpu.vector_store %arg20[%c0_14, %c0_15], %18 {strides = array<i32>} : memref<256x128xbf16, #tpu.memory_space<vmem>>, vector<256x128xbf16>,
    %20 = arith.truncf %17 : vector<256x128xf32> to vector<256x128xbf16>
    %c0_16 = arith.constant 0 : index
    %c0_17 = arith.constant 0 : index
    %21 = vector.load %arg6[%c0_16, %c0_17] : memref<128x128xbf16, #tpu.memory_space<vmem>>, vector<128x128xbf16>
    %cst_18 = arith.constant dense<0.000000e+00> : vector<256x128xf32>
    %22 = tpu.matmul %20, %21, %cst_18 {dimension_numbers = #tpu.dot_dimension_numbers<[1], [0], [0], [1], [0, 0, 1, 1], [], []>} : vector<256x128xbf16>, vector<128x128xbf16>, vector<256x128xf32> -> vector<256x128xf32>
    %c0_19 = arith.constant 0 : index
    %c0_20 = arith.constant 0 : index
    %23 = vector.load %arg7[%c0_19, %c0_20] : memref<1x128xf32, #tpu.memory_space<vmem>>, vector<1x128xf32>
    %24 = vector.broadcast %23 : vector<1x128xf32> to vector<256x128xf32>
    %25 = arith.addf %22, %24 : vector<256x128xf32>
    %cst_21 = arith.constant 0.000000e+00 : f32
    %26 = vector.broadcast %cst_21 : f32 to vector<256x128xf32>
    %27 = arith.maximumf %25, %26 : vector<256x128xf32>
    %28 = arith.truncf %27 : vector<256x128xf32> to vector<256x128xbf16>
    %c0_22 = arith.constant 0 : index
    %c0_23 = arith.constant 0 : index
    %29 = vector.load %arg21[%c0_22, %c0_23] : memref<256x128xbf16, #tpu.memory_space<vmem>>, vector<256x128xbf16>
    tpu.vector_store %arg21[%c0_22, %c0_23], %28 {strides = array<i32>} : memref<256x128xbf16, #tpu.memory_space<vmem>>, vector<256x128xbf16>,
    %30 = arith.truncf %27 : vector<256x128xf32> to vector<256x128xbf16>
    %c0_24 = arith.constant 0 : index
    %c0_25 = arith.constant 0 : index
    %31 = vector.load %arg8[%c0_24, %c0_25] : memref<128x128xbf16, #tpu.memory_space<vmem>>, vector<128x128xbf16>
    %cst_26 = arith.constant dense<0.000000e+00> : vector<256x128xf32>
    %32 = tpu.matmul %30, %31, %cst_26 {dimension_numbers = #tpu.dot_dimension_numbers<[1], [0], [0], [1], [0, 0, 1, 1], [], []>} : vector<256x128xbf16>, vector<128x128xbf16>, vector<256x128xf32> -> vector<256x128xf32>
    %c0_27 = arith.constant 0 : index
    %c0_28 = arith.constant 0 : index
    %33 = vector.load %arg9[%c0_27, %c0_28] : memref<1x128xf32, #tpu.memory_space<vmem>>, vector<1x128xf32>
    %34 = vector.broadcast %33 : vector<1x128xf32> to vector<256x128xf32>
    %35 = arith.addf %32, %34 : vector<256x128xf32>
    %c0_29 = arith.constant 0 : index
    %c0_30 = arith.constant 0 : index
    %36 = vector.load %arg22[%c0_29, %c0_30] : memref<256x128xf32, #tpu.memory_space<vmem>>, vector<256x128xf32>
    tpu.vector_store %arg22[%c0_29, %c0_30], %35 {strides = array<i32>} : memref<256x128xf32, #tpu.memory_space<vmem>>, vector<256x128xf32>,
    %37 = arith.truncf %35 : vector<256x128xf32> to vector<256x128xbf16>
    %c0_31 = arith.constant 0 : index
    %c0_32 = arith.constant 0 : index
    %38 = vector.load %arg10[%c0_31, %c0_32] : memref<128x128xbf16, #tpu.memory_space<vmem>>, vector<128x128xbf16>
    %cst_33 = arith.constant dense<0.000000e+00> : vector<256x128xf32>
    %39 = tpu.matmul %37, %38, %cst_33 {dimension_numbers = #tpu.dot_dimension_numbers<[1], [0], [0], [1], [0, 0, 1, 1], [], []>} : vector<256x128xbf16>, vector<128x128xbf16>, vector<256x128xf32> -> vector<256x128xf32>
    %c0_34 = arith.constant 0 : index
    %c0_35 = arith.constant 0 : index
    %40 = vector.load %arg11[%c0_34, %c0_35] : memref<1x128xf32, #tpu.memory_space<vmem>>, vector<1x128xf32>
    %41 = vector.broadcast %40 : vector<1x128xf32> to vector<256x128xf32>
    %42 = arith.addf %39, %41 : vector<256x128xf32>
    %cst_36 = arith.constant 0.000000e+00 : f32
    %43 = vector.broadcast %cst_36 : f32 to vector<256x128xf32>
    %44 = arith.maximumf %42, %43 : vector<256x128xf32>
    %45 = arith.truncf %44 : vector<256x128xf32> to vector<256x128xbf16>
    %c0_37 = arith.constant 0 : index
    %c0_38 = arith.constant 0 : index
    %46 = vector.load %arg12[%c0_37, %c0_38] : memref<128x128xbf16, #tpu.memory_space<vmem>>, vector<128x128xbf16>
    %cst_39 = arith.constant dense<0.000000e+00> : vector<256x128xf32>
    %47 = tpu.matmul %45, %46, %cst_39 {dimension_numbers = #tpu.dot_dimension_numbers<[1], [0], [0], [1], [0, 0, 1, 1], [], []>} : vector<256x128xbf16>, vector<128x128xbf16>, vector<256x128xf32> -> vector<256x128xf32>
    %c0_40 = arith.constant 0 : index
    %c0_41 = arith.constant 0 : index
    %48 = vector.load %arg13[%c0_40, %c0_41] : memref<1x128xf32, #tpu.memory_space<vmem>>, vector<1x128xf32>
    %49 = vector.broadcast %48 : vector<1x128xf32> to vector<256x128xf32>
    %50 = arith.addf %47, %49 : vector<256x128xf32>
    %cst_42 = arith.constant 0.000000e+00 : f32
    %51 = vector.broadcast %cst_42 : f32 to vector<256x128xf32>
    %52 = arith.maximumf %50, %51 : vector<256x128xf32>
    %53 = arith.truncf %52 : vector<256x128xf32> to vector<256x128xbf16>
    %c0_43 = arith.constant 0 : index
    %c0_44 = arith.constant 0 : index
    %54 = vector.load %arg14[%c0_43, %c0_44] : memref<128x128xbf16, #tpu.memory_space<vmem>>, vector<128x128xbf16>
    %cst_45 = arith.constant dense<0.000000e+00> : vector<256x128xf32>
    %55 = tpu.matmul %53, %54, %cst_45 {dimension_numbers = #tpu.dot_dimension_numbers<[1], [0], [0], [1], [0, 0, 1, 1], [], []>} : vector<256x128xbf16>, vector<128x128xbf16>, vector<256x128xf32> -> vector<256x128xf32>
    %c0_46 = arith.constant 0 : index
    %c0_47 = arith.constant 0 : index
    %56 = vector.load %arg15[%c0_46, %c0_47] : memref<1x128xf32, #tpu.memory_space<vmem>>, vector<1x128xf32>
    %57 = vector.broadcast %56 : vector<1x128xf32> to vector<256x128xf32>
    %58 = arith.addf %55, %57 : vector<256x128xf32>
    %cst_48 = arith.constant 0.000000e+00 : f32
    %59 = vector.broadcast %cst_48 : f32 to vector<256x128xf32>
    %60 = arith.maximumf %58, %59 : vector<256x128xf32>
    %61 = arith.truncf %60 : vector<256x128xf32> to vector<256x128xbf16>
    %c0_49 = arith.constant 0 : index
    %c0_50 = arith.constant 0 : index
    %62 = vector.load %arg16[%c0_49, %c0_50] : memref<128x128xbf16, #tpu.memory_space<vmem>>, vector<128x128xbf16>
    %cst_51 = arith.constant dense<0.000000e+00> : vector<256x128xf32>
    %63 = tpu.matmul %61, %62, %cst_51 {dimension_numbers = #tpu.dot_dimension_numbers<[1], [0], [0], [1], [0, 0, 1, 1], [], []>} : vector<256x128xbf16>, vector<128x128xbf16>, vector<256x128xf32> -> vector<256x128xf32>
    %c0_52 = arith.constant 0 : index
    %c0_53 = arith.constant 0 : index
    %64 = vector.load %arg17[%c0_52, %c0_53] : memref<1x128xf32, #tpu.memory_space<vmem>>, vector<1x128xf32>
    %65 = vector.broadcast %64 : vector<1x128xf32> to vector<256x128xf32>
    %66 = arith.addf %63, %65 : vector<256x128xf32>
    %c0_54 = arith.constant 0 : index
    %c0_55 = arith.constant 0 : index
    %67 = vector.load %arg18[%c0_54, %c0_55] : memref<256x128xf32, #tpu.memory_space<vmem>>, vector<256x128xf32>
    tpu.vector_store %arg18[%c0_54, %c0_55], %66 {strides = array<i32>} : memref<256x128xf32, #tpu.memory_space<vmem>>, vector<256x128xf32>,
    return
  }
  func.func @transform_0(%arg0: i32) -> (i32, i32) {
    %c0_i32 = arith.constant 0 : i32
    %c0_i32_0 = arith.constant 0 : i32
    return %arg0, %c0_i32 : i32, i32
  }
  func.func @transform_1(%arg0: i32) -> (i32, i32) {
    %c0_i32 = arith.constant 0 : i32
    %c0_i32_0 = arith.constant 0 : i32
    %c0_i32_1 = arith.constant 0 : i32
    return %c0_i32, %c0_i32_0 : i32, i32
  }
  func.func @transform_2(%arg0: i32) -> (i32, i32) {
    %c0_i32 = arith.constant 0 : i32
    %c0_i32_0 = arith.constant 0 : i32
    %c0_i32_1 = arith.constant 0 : i32
    return %c0_i32, %c0_i32_0 : i32, i32
  }
  func.func @transform_3(%arg0: i32) -> (i32, i32) {
    %c0_i32 = arith.constant 0 : i32
    %c0_i32_0 = arith.constant 0 : i32
    %c0_i32_1 = arith.constant 0 : i32
    return %c0_i32, %c0_i32_0 : i32, i32
  }
  func.func @transform_4(%arg0: i32) -> (i32, i32) {
    %c0_i32 = arith.constant 0 : i32
    %c0_i32_0 = arith.constant 0 : i32
    %c0_i32_1 = arith.constant 0 : i32
    return %c0_i32, %c0_i32_0 : i32, i32
  }
  func.func @transform_5(%arg0: i32) -> (i32, i32) {
    %c0_i32 = arith.constant 0 : i32
    %c0_i32_0 = arith.constant 0 : i32
    %c0_i32_1 = arith.constant 0 : i32
    return %c0_i32, %c0_i32_0 : i32, i32
  }
  func.func @transform_6(%arg0: i32) -> (i32, i32) {
    %c0_i32 = arith.constant 0 : i32
    %c0_i32_0 = arith.constant 0 : i32
    %c0_i32_1 = arith.constant 0 : i32
    return %c0_i32, %c0_i32_0 : i32, i32
  }
  func.func @transform_7(%arg0: i32) -> (i32, i32) {
    %c0_i32 = arith.constant 0 : i32
    %c0_i32_0 = arith.constant 0 : i32
    %c0_i32_1 = arith.constant 0 : i32
    return %c0_i32, %c0_i32_0 : i32, i32
  }
  func.func @transform_8(%arg0: i32) -> (i32, i32) {
    %c0_i32 = arith.constant 0 : i32
    %c0_i32_0 = arith.constant 0 : i32
    %c0_i32_1 = arith.constant 0 : i32
    return %c0_i32, %c0_i32_0 : i32, i32
  }
  func.func @transform_9(%arg0: i32) -> (i32, i32) {
    %c0_i32 = arith.constant 0 : i32
    %c0_i32_0 = arith.constant 0 : i32
    %c0_i32_1 = arith.constant 0 : i32
    return %c0_i32, %c0_i32_0 : i32, i32
  }
  func.func @transform_10(%arg0: i32) -> (i32, i32) {
    %c0_i32 = arith.constant 0 : i32
    %c0_i32_0 = arith.constant 0 : i32
    %c0_i32_1 = arith.constant 0 : i32
    return %c0_i32, %c0_i32_0 : i32, i32
  }
  func.func @transform_11(%arg0: i32) -> (i32, i32) {
    %c0_i32 = arith.constant 0 : i32
    %c0_i32_0 = arith.constant 0 : i32
    %c0_i32_1 = arith.constant 0 : i32
    return %c0_i32, %c0_i32_0 : i32, i32
  }
  func.func @transform_12(%arg0: i32) -> (i32, i32) {
    %c0_i32 = arith.constant 0 : i32
    %c0_i32_0 = arith.constant 0 : i32
    %c0_i32_1 = arith.constant 0 : i32
    return %c0_i32, %c0_i32_0 : i32, i32
  }
  func.func @transform_13(%arg0: i32) -> (i32, i32) {
    %c0_i32 = arith.constant 0 : i32
    %c0_i32_0 = arith.constant 0 : i32
    %c0_i32_1 = arith.constant 0 : i32
    return %c0_i32, %c0_i32_0 : i32, i32
  }
  func.func @transform_14(%arg0: i32) -> (i32, i32) {
    %c0_i32 = arith.constant 0 : i32
    %c0_i32_0 = arith.constant 0 : i32
    %c0_i32_1 = arith.constant 0 : i32
    return %c0_i32, %c0_i32_0 : i32, i32
  }
  func.func @transform_15(%arg0: i32) -> (i32, i32) {
    %c0_i32 = arith.constant 0 : i32
    %c0_i32_0 = arith.constant 0 : i32
    %c0_i32_1 = arith.constant 0 : i32
    return %c0_i32, %c0_i32_0 : i32, i32
  }
  func.func @transform_16(%arg0: i32) -> (i32, i32) {
    %c0_i32 = arith.constant 0 : i32
    %c0_i32_0 = arith.constant 0 : i32
    %c0_i32_1 = arith.constant 0 : i32
    return %c0_i32, %c0_i32_0 : i32, i32
  }
  func.func @transform_17(%arg0: i32) -> (i32, i32) {
    %c0_i32 = arith.constant 0 : i32
    %c0_i32_0 = arith.constant 0 : i32
    return %arg0, %c0_i32 : i32, i32
  }
  func.func @transform_18(%arg0: i32) -> (i32, i32) {
    %c0_i32 = arith.constant 0 : i32
    %c0_i32_0 = arith.constant 0 : i32
    return %arg0, %c0_i32 : i32, i32
  }
  func.func @transform_19(%arg0: i32) -> (i32, i32) {
    %c0_i32 = arith.constant 0 : i32
    %c0_i32_0 = arith.constant 0 : i32
    return %arg0, %c0_i32 : i32, i32
  }
  func.func @transform_20(%arg0: i32) -> (i32, i32) {
    %c0_i32 = arith.constant 0 : i32
    %c0_i32_0 = arith.constant 0 : i32
    return %arg0, %c0_i32 : i32, i32
  }
  func.func @transform_21(%arg0: i32) -> (i32, i32) {
    %c0_i32 = arith.constant 0 : i32
    %c0_i32_0 = arith.constant 0 : i32
    return %arg0, %c0_i32 : i32, i32
  }
}

</mosaic_0001>

<bundles_post_ra>
// kernel: ae_forward.1
= control target key start
LH: loop header
LB: loop body
LE: loop exit
PB: predicated region body
PF: predicated region fallthrough
CT: control target
= control target key end

     0   :  { %s4598_s0 = inlined_call_operand.vmem [shape: bf16[512,128], index: 0, kind: input, shape index: {}]   ;;  %s4599_s1 = inlined_call_operand.vmem [shape: bf16[128,128], index: 1, kind: input, shape index: {}]   ;;  %s4600_s2 = inlined_call_operand.vmem [shape: f32[1,128], index: 2, kind: input, shape index: {}]   ;;  %s4601_s3 = inlined_call_operand.vmem [shape: bf16[128,128], index: 3, kind: input, shape index: {}]   ;;  %s4602_s4 = inlined_call_operand.vmem [shape: f32[1,128], index: 4, kind: input, shape index: {}]   ;;  %s4603_s5 = inlined_call_operand.vmem [shape: bf16[128,128], index: 5, kind: input, shape index: {}]   ;;  %s4604_s6 = inlined_call_operand.vmem [shape: f32[1,128], index: 6, kind: input, shape index: {}]   ;;  %s4605_s7 = inlined_call_operand.vmem [shape: bf16[128,128], index: 7, kind: input, shape index: {}]   ;;  %s4606_s8 = inlined_call_operand.vmem [shape: f32[1,128], index: 8, kind: input, shape index: {}]   ;;  %s4607_s9 = inlined_call_operand.vmem [shape: bf16[128,128], index: 9, kind: input, shape index: {}]   ;;  %s4608_s10 = inlined_call_operand.vmem [shape: f32[1,128], index: 10, kind: input, shape index: {}]   ;;  %s4609_s11 = inlined_call_operand.vmem [shape: bf16[128,128], index: 11, kind: input, shape index: {}]   ;;  %s4610_s12 = inlined_call_operand.vmem [shape: f32[1,128], index: 12, kind: input, shape index: {}]   ;;  %s4611_s13 = inlined_call_operand.vmem [shape: bf16[128,128], index: 13, kind: input, shape index: {}]   ;;  %s4612_s14 = inlined_call_operand.vmem [shape: f32[1,128], index: 14, kind: input, shape index: {}]   ;;  %s4613_s15 = inlined_call_operand.vmem [shape: bf16[128,128], index: 15, kind: input, shape index: {}]   ;;  %s4614_s16 = inlined_call_operand.vmem [shape: f32[1,128], index: 16, kind: input, shape index: {}]   ;;  %s4615_s17 = inlined_call_operand.vmem [shape: f32[512,128], index: 17, kind: output, shape index: {0}]   ;;  %s4616_s18 = inlined_call_operand.vmem [shape: bf16[512,128], index: 18, kind: output, shape index: {1}]   ;;  %s4617_s19 = inlined_call_operand.vmem [shape: bf16[512,128], index: 19, kind: output, shape index: {2}]   ;;  %s4618_s20 = inlined_call_operand.vmem [shape: bf16[512,128], index: 20, kind: output, shape index: {3}]   ;;  %s4619_s21 = inlined_call_operand.vmem [shape: f32[512,128], index: 21, kind: output, shape index: {4}]  }
   0x1   :  { %4623 = sst [smem:[#allocation2_spill]] %s4598_s0 }
   0x2   :  { %4624 = sst [smem:[#allocation3_spill]] %s4599_s1 }
   0x3   :  { %4625 = sst [smem:[#allocation4_spill]] %s4600_s2  ;;  %s3927_s2 = smov 0  }
   0x4   :  { %4626 = sst [smem:[#allocation5_spill]] %s4601_s3 }
   0x5   :  { %4627 = sst [smem:[#allocation6_spill]] %s4602_s4 }
   0x6   :  { %4628 = sst [smem:[#allocation7_spill]] %s4603_s5 }
   0x7 LB: > { %s3089_s25 = sadd.s32 4294967295, %s3815_s2   ;;  %p3093_p0 = scmp.ge.s32.totalorder %s3815_s2, 1  ;;  %s3815_s2 = sphi %s3927_s2, %s32_s2  }
   0x8   : > { %p597_p1 = scmp.lt.s32.totalorder %s3815_s2, 3 }
   0xa   : > { %p598_p2 = pnand %p3093_p0, %p597_p1 }
   0xb   : > { %s4629_s3 = sld [smem:[#allocation3_spill]] (!%p598_p2)  ;;  %s3094_s22 = sshll.u32 (!%p598_p2), %s3089_s25, 5 }
   0xc   : > { %601 = sbr.rel (%p598_p2) target bundleno = 1440 (0x5a0), region = 88  ;;  %p678_p3 = scmp.lt.s32.totalorder (!%p598_p2), %s3094_s22, 63 }
   0xd   : > { %s4630_s5 = sld [smem:[#allocation2_spill]] (!%p598_p2) }
   0xe   : > { %s4631_s26 = sld [smem:[#allocation5_spill]] (!%p598_p2) }
   0xf   : > { %s4632_s1 = sld [smem:[#allocation4_spill]] (!%p598_p2) }
  0x10   : > { %s4633_s4 = sld [smem:[#allocation7_spill]] (!%p598_p2) }
  0x11   : > { %v3451_v0 = vld [vmem:[%s4629_s3 + $0x38] sm:$0xff]  ;;  %v3450_v1 = vld [vmem:[%s4629_s3 + $0x30] sm:$0xff]  ;;  %v3449_v2 = vld [vmem:[%s4629_s3 + $0x28] sm:$0xff]  ;;  %s4636_s22 = smov (!%p678_p3, %s3094_s22), 63 }
  0x12   : > { %909 = vmatpush.bf16.msra.mxu0 %v3451_v0  ;;  %v3448_v3 = vld [vmem:[%s4629_s3 + $0x20] sm:$0xff]  ;;  %v3447_v4 = vld [vmem:[%s4629_s3 + $0x18] sm:$0xff]  ;;  %v3446_v5 = vld [vmem:[%s4629_s3 + $0x10] sm:$0xff]  ;;  %s3959_s25 = sshll.u32 %s4636_s22, 2 }
  0x13   : > { %v3445_v6 = vld [vmem:[%s4629_s3 + $0x8] sm:$0xff]  ;;  %v3444_v7 = vld [vmem:[%s4629_s3] sm:$0xff]  ;;  %s3968_s23 = scalar_lea.vmem %s4630_s5, %s3959_s25  ;;  %s4014_s28 = scalar_lea.vmem %s4616_s18, %s3959_s25 }
  0x14   : > { %v3428_v8 = vld [vmem:[%s3968_s23] sm:$0xff]  ;;  %v3429_v9 = vld [vmem:[%s3968_s23 + $0x8] sm:$0xff]  ;;  %v3430_v10 = vld [vmem:[%s3968_s23 + $0x10] sm:$0xff]  ;;  %s4634_s5 = sld [smem:[#allocation6_spill]]  ;;  %s4085_s24 = scalar_lea.vmem %s4617_s19, %s3959_s25 }
  0x15   : > { %v3431_v11 = vld [vmem:[%s3968_s23 + $0x18] sm:$0xff]  ;;  %v3432_v12 = vld [vmem:[%s3968_s23 + $0x20] sm:$0xff]  ;;  %v3433_v13 = vld [vmem:[%s3968_s23 + $0x28] sm:$0xff] }
  0x16   : > { %910 = vmatpush.bf16.msra.mxu0 %v3450_v1  ;;  %v3459_v14 = vld [vmem:[%s4631_s26 + $0x38] sm:$0xff]  ;;  %v3458_v15 = vld [vmem:[%s4631_s26 + $0x30] sm:$0xff]  ;;  %v3457_v16 = vld [vmem:[%s4631_s26 + $0x28] sm:$0xff] }
  0x17   : > { %1258 = vmatpush.bf16.msra.mxu1 %v3459_v14  ;;  %v3456_v17 = vld [vmem:[%s4631_s26 + $0x20] sm:$0xff]  ;;  %v3434_v18 = vld [vmem:[%s3968_s23 + $0x30] sm:$0xff]  ;;  %v3455_v19 = vld [vmem:[%s4631_s26 + $0x18] sm:$0xff] }
  0x18   : > { %v3454_v20 = vld [vmem:[%s4631_s26 + $0x10] sm:$0xff]  ;;  %v3453_v21 = vld [vmem:[%s4631_s26 + $0x8] sm:$0xff]  ;;  %v3452_v22 = vld [vmem:[%s4631_s26] sm:$0xff] }
  0x19   : > { %v3435_v23 = vld [vmem:[%s3968_s23 + $0x38] sm:$0xff]  ;;  %v4005_v24 = vld [vmem:[%s4632_s1] ss:$0 sm:$0xff]  ;;  %v3437_v35 = vld [vmem:[%s3968_s23 + $0x48] sm:$0xff] }
  0x1a   : > { %911 = vmatpush.bf16.msra.mxu0 %v3449_v2  ;;  %v3436_v25 = vld [vmem:[%s3968_s23 + $0x40] sm:$0xff]  ;;  %v3438_v48 = vld [vmem:[%s3968_s23 + $0x50] sm:$0xff]  ;;  %v3439_v61 = vld [vmem:[%s3968_s23 + $0x58] sm:$0xff] }
  0x1b   : > { %1259 = vmatpush.bf16.msra.mxu1 %v3458_v15 }
  0x1e   : > { %912 = vmatpush.bf16.msra.mxu0 %v3448_v3 }
  0x1f   : > { %1260 = vmatpush.bf16.msra.mxu1 %v3457_v16 }
  0x22   : > { %913 = vmatpush.bf16.msra.mxu0 %v3447_v4 }
  0x23   : > { %1261 = vmatpush.bf16.msra.mxu1 %v3456_v17 }
  0x26   : > { %914 = vmatpush.bf16.msra.mxu0 %v3446_v5 }
  0x27   : > { %1262 = vmatpush.bf16.msra.mxu1 %v3455_v19 }
  0x2a   : > { %915 = vmatpush.bf16.msra.mxu0 %v3445_v6 }
  0x2b   : > { %1263 = vmatpush.bf16.msra.mxu1 %v3454_v20 }
  0x2e   : > { %916 = vmatpush.bf16.msra.mxu0 %v3444_v7 }
  0x2f   : > { %1264 = vmatpush.bf16.msra.mxu1 %v3453_v21 }
  0x31   : > { %917 = vmatmul.bf16.vlgmr.msra.gmra.mxu0 %v3428_v8 }
  0x33   : > { %1265 = vmatpush.bf16.msra.mxu1 %v3452_v22 }
  0x41   : > { %922 = vmatmul.bf16.gmra.mxu0 %v3429_v9 }
  0x51   : > { %927 = vmatmul.bf16.gmra.mxu0 %v3430_v10  ;;  %v3440_v10 = vld [vmem:[%s3968_s23 + $0x60] sm:$0xff] }
  0x61   : > { %932 = vmatmul.bf16.gmra.mxu0 %v3431_v11 }
  0x71   : > { %937 = vmatmul.bf16.gmra.mxu0 %v3432_v12 }
  0x81   : > { %942 = vmatmul.bf16.gmra.mxu0 %v3433_v13 }
  0x91   : > { %947 = vmatmul.bf16.gmra.mxu0 %v3434_v18 }
  0xa1   : > { %952 = vmatmul.bf16.gmra.mxu0 %v3435_v23  ;;  %v3441_v23 = vld [vmem:[%s3968_s23 + $0x68] sm:$0xff] }
  0xae   : > { %v918_v26 = vpop.f32.mrf.mxu0 }
  0xaf   : > { %v919_v27 = vadd.f32 %v4005_v24, %v918_v26 }
  0xb1   : > { %957 = vmatmul.bf16.gmra.mxu0 %v3436_v25  ;;  %v998_v28 = vmax.f32 %v919_v27, 0.0 }
  0xb3   : > { %v1030_v31 = vpack.c.bf16 %v998_v28, %v998_v28 }
  0xb5   : > { %v1146_v36 = vunpack.c.l.b16 %v1030_v31 }
  0xb6   : > { %v920_v29 = vpop.f32.mrf.mxu0 }
  0xb7   : > { %v921_v30 = vadd.f32 %v4005_v24, %v920_v29 }
  0xb9   : > { %v999_v32 = vmax.f32 %v921_v30, 0.0 }
  0xbb   : > { %v3511_v33 = vpack.c.bf16 %v999_v32, %v998_v28  ;;  %v1031_v34 = vpack.c.bf16 %v999_v32, %v999_v32 }
  0xbd   : > { %3512 = vst [vmem:[%s4014_s28] sm:$0xff] %v3511_v33   ;;  %v1147_v37 = vunpack.c.l.b16 %v1031_v34 }
  0xbe   : > { %v923_v38 = vpop.f32.mrf.mxu0 }
  0xbf   : > { %v1178_v39 = vpack.c.b16 %v1147_v37, %v1146_v36  ;;  %v924_v40 = vadd.f32 %v4005_v24, %v923_v38  ;;  %v3442_v37 = vld [vmem:[%s3968_s23 + $0x70] sm:$0xff] }
  0xc1   : > { %962 = vmatmul.bf16.gmra.mxu0 %v3437_v35  ;;  %1266 = vmatmul.bf16.vlgmr.msra.gmra.mxu1 %v1178_v39  ;;  %v1000_v41 = vmax.f32 %v924_v40, 0.0 }
  0xc3   : > { %v1032_v44 = vpack.c.bf16 %v1000_v41, %v1000_v41 }
  0xc5   : > { %v1148_v49 = vunpack.c.l.b16 %v1032_v44  ;;  %v3466_v44 = vld [vmem:[%s4633_s4 + $0x30] sm:$0xff] }
  0xc6   : > { %v925_v42 = vpop.f32.mrf.mxu0 }
  0xc7   : > { %v926_v43 = vadd.f32 %v4005_v24, %v925_v42  ;;  %v3467_v42 = vld [vmem:[%s4633_s4 + $0x38] sm:$0xff] }
  0xc8   : > { %1607 = vmatpush.bf16.msra.mxu2 %v3467_v42 }
  0xc9   : > { %v1001_v45 = vmax.f32 %v926_v43, 0.0 }
  0xcb   : > { %v3516_v46 = vpack.c.bf16 %v1001_v45, %v1000_v41  ;;  %v1033_v47 = vpack.c.bf16 %v1001_v45, %v1001_v45 }
  0xcc   : > { %1608 = vmatpush.bf16.msra.mxu2 %v3466_v44 }
  0xcd   : > { %3748 = vst [vmem:[%s4014_s28 + $0x8] sm:$0xff] %v3516_v46   ;;  %v1149_v50 = vunpack.c.l.b16 %v1033_v47 }
  0xce   : > { %v928_v51 = vpop.f32.mrf.mxu0 }
  0xcf   : > { %v1179_v52 = vpack.c.b16 %v1149_v50, %v1148_v49  ;;  %v929_v53 = vadd.f32 %v4005_v24, %v928_v51 }
  0xd1   : > { %967 = vmatmul.bf16.gmra.mxu0 %v3438_v48  ;;  %1271 = vmatmul.bf16.gmra.mxu1 %v1179_v52  ;;  %v1002_v54 = vmax.f32 %v929_v53, 0.0  ;;  %v3465_v48 = vld [vmem:[%s4633_s4 + $0x28] sm:$0xff]  ;;  %v3464_v53 = vld [vmem:[%s4633_s4 + $0x20] sm:$0xff] }
  0xd2   : > { %1609 = vmatpush.bf16.msra.mxu2 %v3465_v48 }
  0xd3   : > { %v1034_v57 = vpack.c.bf16 %v1002_v54, %v1002_v54 }
  0xd5   : > { %v1150_v62 = vunpack.c.l.b16 %v1034_v57 }
  0xd6   : > { %v930_v55 = vpop.f32.mrf.mxu0  ;;  %1610 = vmatpush.bf16.msra.mxu2 %v3464_v53 }
  0xd7   : > { %v931_v56 = vadd.f32 %v4005_v24, %v930_v55 }
  0xd9   : > { %v1003_v58 = vmax.f32 %v931_v56, 0.0 }
  0xdb   : > { %v3521_v59 = vpack.c.bf16 %v1003_v58, %v1002_v54  ;;  %v1035_v60 = vpack.c.bf16 %v1003_v58, %v1003_v58  ;;  %v3443_v54 = vld [vmem:[%s3968_s23 + $0x78] sm:$0xff]  ;;  %s4184_s23 = scalar_lea.vmem %s4618_s20, %s3959_s25 }
  0xdd   : > { %3749 = vst [vmem:[%s4014_s28 + $0x10] sm:$0xff] %v3521_v59   ;;  %v1151_v63 = vunpack.c.l.b16 %v1035_v60  ;;  %v3463_v59 = vld [vmem:[%s4633_s4 + $0x18] sm:$0xff] }
  0xde   : > { %v933_v0 = vpop.f32.mrf.mxu0  ;;  %1611 = vmatpush.bf16.msra.mxu2 %v3463_v59 }
  0xdf   : > { %v1180_v1 = vpack.c.b16 %v1151_v63, %v1150_v62  ;;  %v934_v2 = vadd.f32 %v4005_v24, %v933_v0  ;;  %v3462_v62 = vld [vmem:[%s4633_s4 + $0x10] sm:$0xff] }
  0xe1   : > { %972 = vmatmul.bf16.gmra.mxu0 %v3439_v61  ;;  %1276 = vmatmul.bf16.gmra.mxu1 %v1180_v1  ;;  %v1004_v3 = vmax.f32 %v934_v2, 0.0 }
  0xe2   : > { %1612 = vmatpush.bf16.msra.mxu2 %v3462_v62 }
  0xe3   : > { %v1036_v6 = vpack.c.bf16 %v1004_v3, %v1004_v3 }
  0xe5   : > { %v1152_v11 = vunpack.c.l.b16 %v1036_v6 }
  0xe6   : > { %v935_v4 = vpop.f32.mrf.mxu0 }
  0xe7   : > { %v936_v5 = vadd.f32 %v4005_v24, %v935_v4 }
  0xe9   : > { %v1005_v7 = vmax.f32 %v936_v5, 0.0 }
  0xeb   : > { %v3526_v8 = vpack.c.bf16 %v1005_v7, %v1004_v3  ;;  %v1037_v9 = vpack.c.bf16 %v1005_v7, %v1005_v7  ;;  %v3461_v3 = vld [vmem:[%s4633_s4 + $0x8] sm:$0xff] }
  0xec   : > { %1613 = vmatpush.bf16.msra.mxu2 %v3461_v3 }
  0xed   : > { %3750 = vst [vmem:[%s4014_s28 + $0x18] sm:$0xff] %v3526_v8   ;;  %v1153_v12 = vunpack.c.l.b16 %v1037_v9  ;;  %v3460_v8 = vld [vmem:[%s4633_s4] sm:$0xff] }
  0xee   : > { %v938_v13 = vpop.f32.mrf.mxu0 }
  0xef   : > { %v1181_v14 = vpack.c.b16 %v1153_v12, %v1152_v11  ;;  %v939_v15 = vadd.f32 %v4005_v24, %v938_v13 }
  0xf0   : > { %1614 = vmatpush.bf16.msra.mxu2 %v3460_v8  ;;  %v3483_v8 = vld [vmem:[%s4607_s9 + $0x38] sm:$0xff] }
  0xf1   : > { %977 = vmatmul.bf16.gmra.mxu0 %v3440_v10  ;;  %1281 = vmatmul.bf16.gmra.mxu1 %v1181_v14  ;;  %v1006_v16 = vmax.f32 %v939_v15, 0.0 }
  0xf2   : > { %2161 = vmatpush.bf16.msrb.mxu0 %v3483_v8 }
  0xf3   : > { %v1038_v19 = vpack.c.bf16 %v1006_v16, %v1006_v16 }
  0xf5   : > { %v1154_v25 = vunpack.c.l.b16 %v1038_v19  ;;  %v4075_v19 = vld [vmem:[%s4634_s5] ss:$0 sm:$0xff] }
  0xf6   : > { %v940_v17 = vpop.f32.mrf.mxu0 }
  0xf7   : > { %v941_v18 = vadd.f32 %v4005_v24, %v940_v17 }
  0xf9   : > { %v1007_v20 = vmax.f32 %v941_v18, 0.0 }
  0xfb   : > { %v3531_v21 = vpack.c.bf16 %v1007_v20, %v1006_v16  ;;  %v1039_v22 = vpack.c.bf16 %v1007_v20, %v1007_v20 }
  0xfd   : > { %3751 = vst [vmem:[%s4014_s28 + $0x20] sm:$0xff] %v3531_v21   ;;  %v1155_v26 = vunpack.c.l.b16 %v1039_v22 }
  0xfe   : > { %v943_v27 = vpop.f32.mrf.mxu0 }
  0xff   : > { %v1182_v28 = vpack.c.b16 %v1155_v26, %v1154_v25  ;;  %v944_v29 = vadd.f32 %v4005_v24, %v943_v27 }
 0x101   : > { %982 = vmatmul.bf16.gmra.mxu0 %v3441_v23  ;;  %1286 = vmatmul.bf16.gmra.mxu1 %v1182_v28  ;;  %v1008_v30 = vmax.f32 %v944_v29, 0.0 }
 0x103   : > { %v1040_v33 = vpack.c.bf16 %v1008_v30, %v1008_v30 }
 0x105   : > { %v1156_v38 = vunpack.c.l.b16 %v1040_v33 }
 0x106   : > { %v945_v31 = vpop.f32.mrf.mxu0 }
 0x107   : > { %v946_v32 = vadd.f32 %v4005_v24, %v945_v31 }
 0x109   : > { %v1009_v34 = vmax.f32 %v946_v32, 0.0 }
 0x10b   : > { %v3536_v35 = vpack.c.bf16 %v1009_v34, %v1008_v30  ;;  %v1041_v36 = vpack.c.bf16 %v1009_v34, %v1009_v34 }
 0x10d   : > { %3752 = vst [vmem:[%s4014_s28 + $0x28] sm:$0xff] %v3536_v35   ;;  %v1157_v39 = vunpack.c.l.b16 %v1041_v36 }
 0x10e   : > { %v948_v40 = vpop.f32.mrf.mxu0 }
 0x10f   : > { %v1183_v41 = vpack.c.b16 %v1157_v39, %v1156_v38  ;;  %v949_v43 = vadd.f32 %v4005_v24, %v948_v40 }
 0x111   : > { %987 = vmatmul.bf16.gmra.mxu0 %v3442_v37  ;;  %1291 = vmatmul.bf16.gmra.mxu1 %v1183_v41  ;;  %v1010_v45 = vmax.f32 %v949_v43, 0.0 }
 0x113   : > { %v1042_v49 = vpack.c.bf16 %v1010_v45, %v1010_v45 }
 0x115   : > { %v1158_v55 = vunpack.c.l.b16 %v1042_v49 }
 0x116   : > { %v950_v46 = vpop.f32.mrf.mxu0 }
 0x117   : > { %v951_v47 = vadd.f32 %v4005_v24, %v950_v46 }
 0x119   : > { %v1011_v50 = vmax.f32 %v951_v47, 0.0 }
 0x11b   : > { %v3541_v51 = vpack.c.bf16 %v1011_v50, %v1010_v45  ;;  %v1043_v52 = vpack.c.bf16 %v1011_v50, %v1011_v50 }
 0x11d   : > { %3753 = vst [vmem:[%s4014_s28 + $0x30] sm:$0xff] %v3541_v51   ;;  %v1159_v56 = vunpack.c.l.b16 %v1043_v52 }
 0x11e   : > { %v953_v57 = vpop.f32.mrf.mxu0 }
 0x11f   : > { %v1184_v58 = vpack.c.b16 %v1159_v56, %v1158_v55  ;;  %v954_v60 = vadd.f32 %v4005_v24, %v953_v57 }
 0x121   : > { %992 = vmatmul.bf16.gmra.mxu0 %v3443_v54  ;;  %1296 = vmatmul.bf16.gmra.mxu1 %v1184_v58  ;;  %v1012_v61 = vmax.f32 %v954_v60, 0.0 }
 0x123   : > { %v1044_v1 = vpack.c.bf16 %v1012_v61, %v1012_v61 }
 0x125   : > { %v1160_v6 = vunpack.c.l.b16 %v1044_v1 }
 0x126   : > { %v955_v63 = vpop.f32.mrf.mxu0 }
 0x127   : > { %v956_v0 = vadd.f32 %v4005_v24, %v955_v63 }
 0x129   : > { %v1013_v2 = vmax.f32 %v956_v0, 0.0 }
 0x12b   : > { %v3546_v4 = vpack.c.bf16 %v1013_v2, %v1012_v61  ;;  %v1045_v5 = vpack.c.bf16 %v1013_v2, %v1013_v2 }
 0x12d   : > { %3754 = vst [vmem:[%s4014_s28 + $0x38] sm:$0xff] %v3546_v4   ;;  %v1161_v7 = vunpack.c.l.b16 %v1045_v5 }
 0x12e   : > { %v958_v9 = vpop.f32.mrf.mxu0 }
 0x12f   : > { %v1185_v10 = vpack.c.b16 %v1161_v7, %v1160_v6  ;;  %v959_v11 = vadd.f32 %v4005_v24, %v958_v9 }
 0x131   : > { %1301 = vmatmul.bf16.gmra.mxu1 %v1185_v10  ;;  %v1014_v12 = vmax.f32 %v959_v11, 0.0 }
 0x133   : > { %v1046_v15 = vpack.c.bf16 %v1014_v12, %v1014_v12 }
 0x135   : > { %v1162_v20 = vunpack.c.l.b16 %v1046_v15 }
 0x136   : > { %v960_v13 = vpop.f32.mrf.mxu0 }
 0x137   : > { %v961_v14 = vadd.f32 %v4005_v24, %v960_v13 }
 0x139   : > { %v1015_v16 = vmax.f32 %v961_v14, 0.0 }
 0x13b   : > { %v3551_v17 = vpack.c.bf16 %v1015_v16, %v1014_v12  ;;  %v1047_v18 = vpack.c.bf16 %v1015_v16, %v1015_v16 }
 0x13d   : > { %3755 = vst [vmem:[%s4014_s28 + $0x40] sm:$0xff] %v3551_v17   ;;  %v1163_v21 = vunpack.c.l.b16 %v1047_v18 }
 0x13e   : > { %v963_v22 = vpop.f32.mrf.mxu0  ;;  %v1267_v23 = vpop.f32.mrf.mxu1 }
 0x13f   : > { %v1186_v25 = vpack.c.b16 %v1163_v21, %v1162_v20  ;;  %v964_v26 = vadd.f32 %v4005_v24, %v963_v22  ;;  %v1268_v27 = vadd.f32 %v4075_v19, %v1267_v23 }
 0x141   : > { %1306 = vmatmul.bf16.gmra.mxu1 %v1186_v25  ;;  %v1016_v28 = vmax.f32 %v964_v26, 0.0  ;;  %v1347_v29 = vmax.f32 %v1268_v27, 0.0 }
 0x143   : > { %v1048_v34 = vpack.c.bf16 %v1016_v28, %v1016_v28  ;;  %v1379_v35 = vpack.c.bf16 %v1347_v29, %v1347_v29 }
 0x145   : > { %v1164_v42 = vunpack.c.l.b16 %v1048_v34  ;;  %v1495_v44 = vunpack.c.l.b16 %v1379_v35 }
 0x146   : > { %v965_v30 = vpop.f32.mrf.mxu0  ;;  %v1269_v31 = vpop.f32.mrf.mxu1 }
 0x147   : > { %v966_v32 = vadd.f32 %v4005_v24, %v965_v30  ;;  %v1270_v33 = vadd.f32 %v4075_v19, %v1269_v31 }
 0x149   : > { %v1017_v36 = vmax.f32 %v966_v32, 0.0  ;;  %v1348_v37 = vmax.f32 %v1270_v33, 0.0 }
 0x14b   : > { %v3556_v38 = vpack.c.bf16 %v1017_v36, %v1016_v28  ;;  %v3591_v39 = vpack.c.bf16 %v1348_v37, %v1347_v29  ;;  %v1049_v40 = vpack.c.bf16 %v1017_v36, %v1017_v36  ;;  %v1380_v41 = vpack.c.bf16 %v1348_v37, %v1348_v37 }
 0x14d   : > { %3756 = vst [vmem:[%s4014_s28 + $0x48] sm:$0xff] %v3556_v38   ;;  %v1165_v43 = vunpack.c.l.b16 %v1049_v40  ;;  %v1496_v45 = vunpack.c.l.b16 %v1380_v41 }
 0x14e   : > { %3592 = vst [vmem:[%s4085_s24] sm:$0xff] %v3591_v39   ;;  %v968_v46 = vpop.f32.mrf.mxu0  ;;  %v1272_v47 = vpop.f32.mrf.mxu1 }
 0x14f   : > { %v1187_v48 = vpack.c.b16 %v1165_v43, %v1164_v42  ;;  %v1527_v49 = vpack.c.b16 %v1496_v45, %v1495_v44  ;;  %v969_v50 = vadd.f32 %v4005_v24, %v968_v46  ;;  %v1273_v51 = vadd.f32 %v4075_v19, %v1272_v47 }
 0x151   : > { %1311 = vmatmul.bf16.gmra.mxu1 %v1187_v48  ;;  %1615 = vmatmul.bf16.vlgmr.msra.gmra.mxu2 %v1527_v49  ;;  %v1018_v52 = vmax.f32 %v969_v50, 0.0  ;;  %v1349_v53 = vmax.f32 %v1273_v51, 0.0 }
 0x153   : > { %v1050_v58 = vpack.c.bf16 %v1018_v52, %v1018_v52  ;;  %v1381_v59 = vpack.c.bf16 %v1349_v53, %v1349_v53 }
 0x155   : > { %v1166_v2 = vunpack.c.l.b16 %v1050_v58  ;;  %v1497_v4 = vunpack.c.l.b16 %v1381_v59  ;;  %v3482_v59 = vld [vmem:[%s4607_s9 + $0x30] sm:$0xff] }
 0x156   : > { %v970_v54 = vpop.f32.mrf.mxu0  ;;  %v1274_v55 = vpop.f32.mrf.mxu1  ;;  %2162 = vmatpush.bf16.msrb.mxu0 %v3482_v59 }
 0x157   : > { %v971_v56 = vadd.f32 %v4005_v24, %v970_v54  ;;  %v1275_v57 = vadd.f32 %v4075_v19, %v1274_v55 }
 0x159   : > { %v1019_v60 = vmax.f32 %v971_v56, 0.0  ;;  %v1350_v61 = vmax.f32 %v1275_v57, 0.0 }
 0x15b   : > { %v3561_v62 = vpack.c.bf16 %v1019_v60, %v1018_v52  ;;  %v3596_v63 = vpack.c.bf16 %v1350_v61, %v1349_v53  ;;  %v1051_v0 = vpack.c.bf16 %v1019_v60, %v1019_v60  ;;  %v1382_v1 = vpack.c.bf16 %v1350_v61, %v1350_v61 }
 0x15d   : > { %3757 = vst [vmem:[%s4014_s28 + $0x50] sm:$0xff] %v3561_v62   ;;  %v1167_v3 = vunpack.c.l.b16 %v1051_v0  ;;  %v1498_v5 = vunpack.c.l.b16 %v1382_v1 }
 0x15e   : > { %3763 = vst [vmem:[%s4085_s24 + $0x8] sm:$0xff] %v3596_v63   ;;  %v973_v6 = vpop.f32.mrf.mxu0  ;;  %v1277_v7 = vpop.f32.mrf.mxu1 }
 0x15f   : > { %v1188_v9 = vpack.c.b16 %v1167_v3, %v1166_v2  ;;  %v1528_v10 = vpack.c.b16 %v1498_v5, %v1497_v4  ;;  %v974_v11 = vadd.f32 %v4005_v24, %v973_v6  ;;  %v1278_v12 = vadd.f32 %v4075_v19, %v1277_v7 }
 0x161   : > { %1316 = vmatmul.bf16.gmra.mxu1 %v1188_v9  ;;  %1620 = vmatmul.bf16.gmra.mxu2 %v1528_v10  ;;  %v1020_v13 = vmax.f32 %v974_v11, 0.0  ;;  %v1351_v14 = vmax.f32 %v1278_v12, 0.0 }
 0x163   : > { %v1052_v20 = vpack.c.bf16 %v1020_v13, %v1020_v13  ;;  %v1383_v21 = vpack.c.bf16 %v1351_v14, %v1351_v14 }
 0x165   : > { %v1168_v29 = vunpack.c.l.b16 %v1052_v20  ;;  %v1499_v31 = vunpack.c.l.b16 %v1383_v21 }
 0x166   : > { %v975_v15 = vpop.f32.mrf.mxu0  ;;  %v1279_v16 = vpop.f32.mrf.mxu1 }
 0x167   : > { %v976_v17 = vadd.f32 %v4005_v24, %v975_v15  ;;  %v1280_v18 = vadd.f32 %v4075_v19, %v1279_v16 }
 0x169   : > { %v1021_v22 = vmax.f32 %v976_v17, 0.0  ;;  %v1352_v23 = vmax.f32 %v1280_v18, 0.0 }
 0x16b   : > { %v3566_v25 = vpack.c.bf16 %v1021_v22, %v1020_v13  ;;  %v3601_v26 = vpack.c.bf16 %v1352_v23, %v1351_v14  ;;  %v1053_v27 = vpack.c.bf16 %v1021_v22, %v1021_v22  ;;  %v1384_v28 = vpack.c.bf16 %v1352_v23, %v1352_v23 }
 0x16d   : > { %3758 = vst [vmem:[%s4014_s28 + $0x58] sm:$0xff] %v3566_v25   ;;  %v1169_v30 = vunpack.c.l.b16 %v1053_v27  ;;  %v1500_v32 = vunpack.c.l.b16 %v1384_v28 }
 0x16e   : > { %3764 = vst [vmem:[%s4085_s24 + $0x10] sm:$0xff] %v3601_v26   ;;  %v978_v33 = vpop.f32.mrf.mxu0  ;;  %v1282_v34 = vpop.f32.mrf.mxu1 }
 0x16f   : > { %v1189_v35 = vpack.c.b16 %v1169_v30, %v1168_v29  ;;  %v1529_v36 = vpack.c.b16 %v1500_v32, %v1499_v31  ;;  %v979_v37 = vadd.f32 %v4005_v24, %v978_v33  ;;  %v1283_v38 = vadd.f32 %v4075_v19, %v1282_v34 }
 0x171   : > { %1321 = vmatmul.bf16.gmra.mxu1 %v1189_v35  ;;  %1625 = vmatmul.bf16.gmra.mxu2 %v1529_v36  ;;  %v1022_v39 = vmax.f32 %v979_v37, 0.0  ;;  %v1353_v40 = vmax.f32 %v1283_v38, 0.0 }
 0x173   : > { %v1054_v45 = vpack.c.bf16 %v1022_v39, %v1022_v39  ;;  %v1385_v46 = vpack.c.bf16 %v1353_v40, %v1353_v40 }
 0x175   : > { %v1170_v53 = vunpack.c.l.b16 %v1054_v45  ;;  %v1501_v55 = vunpack.c.l.b16 %v1385_v46 }
 0x176   : > { %v980_v41 = vpop.f32.mrf.mxu0  ;;  %v1284_v42 = vpop.f32.mrf.mxu1 }
 0x177   : > { %v981_v43 = vadd.f32 %v4005_v24, %v980_v41  ;;  %v1285_v44 = vadd.f32 %v4075_v19, %v1284_v42 }
 0x179   : > { %v1023_v47 = vmax.f32 %v981_v43, 0.0  ;;  %v1354_v48 = vmax.f32 %v1285_v44, 0.0  ;;  %v3481_v44 = vld [vmem:[%s4607_s9 + $0x28] sm:$0xff] }
 0x17a   : > { %2163 = vmatpush.bf16.msrb.mxu0 %v3481_v44 }
 0x17b   : > { %v1055_v49 = vpack.c.bf16 %v1023_v47, %v1023_v47  ;;  %v3571_v50 = vpack.c.bf16 %v1023_v47, %v1022_v39  ;;  %v3606_v51 = vpack.c.bf16 %v1354_v48, %v1353_v40  ;;  %v1386_v52 = vpack.c.bf16 %v1354_v48, %v1354_v48 }
 0x17d   : > { %3759 = vst [vmem:[%s4014_s28 + $0x60] sm:$0xff] %v3571_v50   ;;  %v1171_v54 = vunpack.c.l.b16 %v1055_v49  ;;  %v1502_v56 = vunpack.c.l.b16 %v1386_v52 }
 0x17e   : > { %3765 = vst [vmem:[%s4085_s24 + $0x18] sm:$0xff] %v3606_v51   ;;  %v983_v57 = vpop.f32.mrf.mxu0  ;;  %v1287_v58 = vpop.f32.mrf.mxu1 }
 0x17f   : > { %v1190_v60 = vpack.c.b16 %v1171_v54, %v1170_v53  ;;  %v1530_v61 = vpack.c.b16 %v1502_v56, %v1501_v55  ;;  %v984_v62 = vadd.f32 %v4005_v24, %v983_v57  ;;  %v1288_v63 = vadd.f32 %v4075_v19, %v1287_v58  ;;  %v3475_v57 = vld [vmem:[%s4605_s7 + $0x38] sm:$0xff] }
 0x180   : > { %1956 = vmatpush.bf16.msra.mxu3 %v3475_v57 }
 0x181   : > { %1326 = vmatmul.bf16.gmra.mxu1 %v1190_v60  ;;  %1630 = vmatmul.bf16.gmra.mxu2 %v1530_v61  ;;  %v1024_v0 = vmax.f32 %v984_v62, 0.0  ;;  %v1355_v1 = vmax.f32 %v1288_v63, 0.0 }
 0x183   : > { %v1056_v6 = vpack.c.bf16 %v1024_v0, %v1024_v0  ;;  %v1387_v7 = vpack.c.bf16 %v1355_v1, %v1355_v1 }
 0x185   : > { %v1172_v14 = vunpack.c.l.b16 %v1056_v6  ;;  %v1503_v16 = vunpack.c.l.b16 %v1387_v7 }
 0x186   : > { %v985_v2 = vpop.f32.mrf.mxu0  ;;  %v1289_v3 = vpop.f32.mrf.mxu1 }
 0x187   : > { %v986_v4 = vadd.f32 %v4005_v24, %v985_v2  ;;  %v1290_v5 = vadd.f32 %v4075_v19, %v1289_v3 }
 0x189   : > { %v1025_v8 = vmax.f32 %v986_v4, 0.0  ;;  %v1356_v9 = vmax.f32 %v1290_v5, 0.0 }
 0x18b   : > { %v1057_v10 = vpack.c.bf16 %v1025_v8, %v1025_v8  ;;  %v3576_v11 = vpack.c.bf16 %v1025_v8, %v1024_v0  ;;  %v3611_v12 = vpack.c.bf16 %v1356_v9, %v1355_v1  ;;  %v1388_v13 = vpack.c.bf16 %v1356_v9, %v1356_v9  ;;  %v3473_v9 = vld [vmem:[%s4605_s7 + $0x28] sm:$0xff] }
 0x18d   : > { %3760 = vst [vmem:[%s4014_s28 + $0x68] sm:$0xff] %v3576_v11   ;;  %v1173_v15 = vunpack.c.l.b16 %v1057_v10  ;;  %v1504_v17 = vunpack.c.l.b16 %v1388_v13  ;;  %v3472_v11 = vld [vmem:[%s4605_s7 + $0x20] sm:$0xff] }
 0x18e   : > { %3766 = vst [vmem:[%s4085_s24 + $0x20] sm:$0xff] %v3611_v12   ;;  %v988_v18 = vpop.f32.mrf.mxu0  ;;  %v1292_v20 = vpop.f32.mrf.mxu1 }
 0x18f   : > { %v1191_v21 = vpack.c.b16 %v1173_v15, %v1172_v14  ;;  %v1531_v22 = vpack.c.b16 %v1504_v17, %v1503_v16  ;;  %v989_v23 = vadd.f32 %v4005_v24, %v988_v18  ;;  %v1293_v25 = vadd.f32 %v4075_v19, %v1292_v20  ;;  %v3471_v15 = vld [vmem:[%s4605_s7 + $0x18] sm:$0xff] }
 0x191   : > { %1331 = vmatmul.bf16.gmra.mxu1 %v1191_v21  ;;  %1635 = vmatmul.bf16.gmra.mxu2 %v1531_v22  ;;  %v1026_v26 = vmax.f32 %v989_v23, 0.0  ;;  %v1357_v27 = vmax.f32 %v1293_v25, 0.0  ;;  %v3470_v21 = vld [vmem:[%s4605_s7 + $0x10] sm:$0xff]  ;;  %v3480_v25 = vld [vmem:[%s4607_s9 + $0x20] sm:$0xff] }
 0x192   : > { %2164 = vmatpush.bf16.msrb.mxu0 %v3480_v25 }
 0x193   : > { %v1058_v32 = vpack.c.bf16 %v1026_v26, %v1026_v26  ;;  %v1389_v33 = vpack.c.bf16 %v1357_v27, %v1357_v27 }
 0x195   : > { %v1174_v40 = vunpack.c.l.b16 %v1058_v32  ;;  %v1505_v42 = vunpack.c.l.b16 %v1389_v33 }
 0x196   : > { %v990_v28 = vpop.f32.mrf.mxu0  ;;  %v1294_v29 = vpop.f32.mrf.mxu1 }
 0x197   : > { %v991_v30 = vadd.f32 %v4005_v24, %v990_v28  ;;  %v1295_v31 = vadd.f32 %v4075_v19, %v1294_v29  ;;  %v3469_v28 = vld [vmem:[%s4605_s7 + $0x8] sm:$0xff] }
 0x199   : > { %v1027_v34 = vmax.f32 %v991_v30, 0.0  ;;  %v1358_v35 = vmax.f32 %v1295_v31, 0.0  ;;  %v3468_v30 = vld [vmem:[%s4605_s7] sm:$0xff] }
 0x19b   : > { %v1059_v36 = vpack.c.bf16 %v1027_v34, %v1027_v34  ;;  %v3581_v37 = vpack.c.bf16 %v1027_v34, %v1026_v26  ;;  %v3616_v38 = vpack.c.bf16 %v1358_v35, %v1357_v27  ;;  %v1390_v39 = vpack.c.bf16 %v1358_v35, %v1358_v35 }
 0x19d   : > { %3761 = vst [vmem:[%s4014_s28 + $0x70] sm:$0xff] %v3581_v37   ;;  %v1175_v41 = vunpack.c.l.b16 %v1059_v36  ;;  %v1506_v43 = vunpack.c.l.b16 %v1390_v39 }
 0x19e   : > { %3767 = vst [vmem:[%s4085_s24 + $0x28] sm:$0xff] %v3616_v38   ;;  %v993_v45 = vpop.f32.mrf.mxu0  ;;  %v1297_v46 = vpop.f32.mrf.mxu1 }
 0x19f   : > { %v1192_v47 = vpack.c.b16 %v1175_v41, %v1174_v40  ;;  %v1532_v48 = vpack.c.b16 %v1506_v43, %v1505_v42  ;;  %v994_v49 = vadd.f32 %v4005_v24, %v993_v45  ;;  %v1298_v50 = vadd.f32 %v4075_v19, %v1297_v46  ;;  %v4171_v43 = vld [vmem:[%s4604_s6] ss:$0 sm:$0xff] }
 0x1a1   : > { %1336 = vmatmul.bf16.gmra.mxu1 %v1192_v47  ;;  %1640 = vmatmul.bf16.gmra.mxu2 %v1532_v48  ;;  %v1028_v51 = vmax.f32 %v994_v49, 0.0  ;;  %v1359_v52 = vmax.f32 %v1298_v50, 0.0 }
 0x1a3   : > { %v1060_v58 = vpack.c.bf16 %v1028_v51, %v1028_v51  ;;  %v1391_v59 = vpack.c.bf16 %v1359_v52, %v1359_v52 }
 0x1a5   : > { %v1176_v2 = vunpack.c.l.b16 %v1060_v58  ;;  %v1507_v4 = vunpack.c.l.b16 %v1391_v59  ;;  %v3479_v58 = vld [vmem:[%s4607_s9 + $0x18] sm:$0xff] }
 0x1a6   : > { %v995_v53 = vpop.f32.mrf.mxu0  ;;  %v1299_v54 = vpop.f32.mrf.mxu1  ;;  %2165 = vmatpush.bf16.msrb.mxu0 %v3479_v58 }
 0x1a7   : > { %v996_v55 = vadd.f32 %v4005_v24, %v995_v53  ;;  %v1300_v56 = vadd.f32 %v4075_v19, %v1299_v54  ;;  %v3474_v24 = vld [vmem:[%s4605_s7 + $0x30] sm:$0xff] }
 0x1a8   : > { %1957 = vmatpush.bf16.msra.mxu3 %v3474_v24 }
 0x1a9   : > { %v1029_v60 = vmax.f32 %v996_v55, 0.0  ;;  %v1360_v61 = vmax.f32 %v1300_v56, 0.0 }
 0x1ab   : > { %v1061_v62 = vpack.c.bf16 %v1029_v60, %v1029_v60  ;;  %v3586_v63 = vpack.c.bf16 %v1029_v60, %v1028_v51  ;;  %v3621_v0 = vpack.c.bf16 %v1360_v61, %v1359_v52  ;;  %v1392_v1 = vpack.c.bf16 %v1360_v61, %v1360_v61 }
 0x1ac   : > { %1958 = vmatpush.bf16.msra.mxu3 %v3473_v9 }
 0x1ad   : > { %3762 = vst [vmem:[%s4014_s28 + $0x78] sm:$0xff] %v3586_v63   ;;  %v1177_v3 = vunpack.c.l.b16 %v1061_v62  ;;  %v1508_v5 = vunpack.c.l.b16 %v1392_v1  ;;  %s3097_s28 = sshll.u32 %s4636_s22, 3 }
 0x1ae   : > { %3768 = vst [vmem:[%s4085_s24 + $0x30] sm:$0xff] %v3621_v0   ;;  %v1302_v6 = vpop.f32.mrf.mxu1  ;;  %s4265_s30 = scalar_lea.vmem %s4619_s21, %s3097_s28 }
 0x1af   : > { %v1193_v7 = vpack.c.b16 %v1177_v3, %v1176_v2  ;;  %v1533_v8 = vpack.c.b16 %v1508_v5, %v1507_v4  ;;  %v1303_v10 = vadd.f32 %v4075_v19, %v1302_v6  ;;  %v3491_v6 = vld [vmem:[%s4609_s11 + $0x38] sm:$0xff] }
 0x1b0   : > { %1959 = vmatpush.bf16.msra.mxu3 %v3472_v11  ;;  %2366 = vmatpush.bf16.msrb.mxu1 %v3491_v6 }
 0x1b1   : > { %1341 = vmatmul.bf16.gmra.mxu1 %v1193_v7  ;;  %1645 = vmatmul.bf16.gmra.mxu2 %v1533_v8  ;;  %v1361_v12 = vmax.f32 %v1303_v10, 0.0 }
 0x1b3   : > { %v1393_v16 = vpack.c.bf16 %v1361_v12, %v1361_v12 }
 0x1b4   : > { %1960 = vmatpush.bf16.msra.mxu3 %v3471_v15 }
 0x1b5   : > { %v1509_v22 = vunpack.c.l.b16 %v1393_v16 }
 0x1b6   : > { %v1304_v13 = vpop.f32.mrf.mxu1 }
 0x1b7   : > { %v1305_v14 = vadd.f32 %v4075_v19, %v1304_v13 }
 0x1b8   : > { %1961 = vmatpush.bf16.msra.mxu3 %v3470_v21 }
 0x1b9   : > { %v1362_v17 = vmax.f32 %v1305_v14, 0.0 }
 0x1bb   : > { %v3626_v18 = vpack.c.bf16 %v1362_v17, %v1361_v12  ;;  %v1394_v20 = vpack.c.bf16 %v1362_v17, %v1362_v17 }
 0x1bc   : > { %1962 = vmatpush.bf16.msra.mxu3 %v3469_v28 }
 0x1bd   : > { %3769 = vst [vmem:[%s4085_s24 + $0x38] sm:$0xff] %v3626_v18   ;;  %v1510_v23 = vunpack.c.l.b16 %v1394_v20 }
 0x1be   : > { %v1307_v26 = vpop.f32.mrf.mxu1 }
 0x1bf   : > { %v1534_v27 = vpack.c.b16 %v1510_v23, %v1509_v22  ;;  %v1308_v29 = vadd.f32 %v4075_v19, %v1307_v26 }
 0x1c0   : > { %1963 = vmatpush.bf16.msra.mxu3 %v3468_v30 }
 0x1c1   : > { %1650 = vmatmul.bf16.gmra.mxu2 %v1534_v27  ;;  %v1363_v31 = vmax.f32 %v1308_v29, 0.0 }
 0x1c3   : > { %v1395_v34 = vpack.c.bf16 %v1363_v31, %v1363_v31 }
 0x1c5   : > { %v1511_v38 = vunpack.c.l.b16 %v1395_v34 }
 0x1c6   : > { %v1309_v32 = vpop.f32.mrf.mxu1 }
 0x1c7   : > { %v1310_v33 = vadd.f32 %v4075_v19, %v1309_v32 }
 0x1c9   : > { %v1364_v35 = vmax.f32 %v1310_v33, 0.0 }
 0x1cb   : > { %v3631_v36 = vpack.c.bf16 %v1364_v35, %v1363_v31  ;;  %v1396_v37 = vpack.c.bf16 %v1364_v35, %v1364_v35 }
 0x1cd   : > { %3770 = vst [vmem:[%s4085_s24 + $0x40] sm:$0xff] %v3631_v36   ;;  %v1512_v39 = vunpack.c.l.b16 %v1396_v37 }
 0x1ce   : > { %v1312_v40 = vpop.f32.mrf.mxu1 }
 0x1cf   : > { %v1535_v41 = vpack.c.b16 %v1512_v39, %v1511_v38  ;;  %v1313_v42 = vadd.f32 %v4075_v19, %v1312_v40 }
 0x1d1   : > { %1655 = vmatmul.bf16.gmra.mxu2 %v1535_v41  ;;  %v1365_v45 = vmax.f32 %v1313_v42, 0.0 }
 0x1d3   : > { %v1397_v49 = vpack.c.bf16 %v1365_v45, %v1365_v45 }
 0x1d4   : > { %v1616_v44 = vpop.f32.mrf.mxu2 }
 0x1d5   : > { %v1617_v47 = vadd.f32 %v4171_v43, %v1616_v44  ;;  %v1513_v56 = vunpack.c.l.b16 %v1397_v49 }
 0x1d6   : > { %v1314_v46 = vpop.f32.mrf.mxu1 }
 0x1d7   : > { %v1315_v48 = vadd.f32 %v4075_v19, %v1314_v46  ;;  %v1696_v51 = vmax.f32 %v1617_v47, 0.0  ;;  %v3478_v46 = vld [vmem:[%s4607_s9 + $0x10] sm:$0xff] }
 0x1d8   : > { %2166 = vmatpush.bf16.msrb.mxu0 %v3478_v46 }
 0x1d9   : > { %v1366_v50 = vmax.f32 %v1315_v48, 0.0  ;;  %v1728_v60 = vpack.c.bf16 %v1696_v51, %v1696_v51 }
 0x1db   : > { %v3636_v52 = vpack.c.bf16 %v1366_v50, %v1365_v45  ;;  %v1398_v53 = vpack.c.bf16 %v1366_v50, %v1366_v50  ;;  %v1844_v24 = vunpack.c.l.b16 %v1728_v60 }
 0x1dc   : > { %v1618_v54 = vpop.f32.mrf.mxu2 }
 0x1dd   : > { %3771 = vst [vmem:[%s4085_s24 + $0x48] sm:$0xff] %v3636_v52   ;;  %v1619_v55 = vadd.f32 %v4171_v43, %v1618_v54  ;;  %v1514_v57 = vunpack.c.l.b16 %v1398_v53 }
 0x1de   : > { %v1317_v59 = vpop.f32.mrf.mxu1 }
 0x1df   : > { %v1697_v61 = vmax.f32 %v1619_v55, 0.0  ;;  %v1536_v62 = vpack.c.b16 %v1514_v57, %v1513_v56  ;;  %v1318_v0 = vadd.f32 %v4075_v19, %v1317_v59  ;;  %v3490_v59 = vld [vmem:[%s4609_s11 + $0x30] sm:$0xff] }
 0x1e0   : > { %2367 = vmatpush.bf16.msrb.mxu1 %v3490_v59 }
 0x1e1   : > { %v3671_v63 = vpack.c.bf16 %v1697_v61, %v1696_v51  ;;  %1660 = vmatmul.bf16.gmra.mxu2 %v1536_v62  ;;  %v1729_v1 = vpack.c.bf16 %v1697_v61, %v1697_v61  ;;  %v1367_v4 = vmax.f32 %v1318_v0, 0.0 }
 0x1e3   : > { %3672 = vst [vmem:[%s4184_s23] sm:$0xff] %v3671_v63   ;;  %v1845_v2 = vunpack.c.l.b16 %v1729_v1  ;;  %v1399_v10 = vpack.c.bf16 %v1367_v4, %v1367_v4 }
 0x1e4   : > { %v1621_v3 = vpop.f32.mrf.mxu2 }
 0x1e5   : > { %v1876_v5 = vpack.c.b16 %v1845_v2, %v1844_v24  ;;  %v1622_v8 = vadd.f32 %v4171_v43, %v1621_v3  ;;  %v1515_v17 = vunpack.c.l.b16 %v1399_v10 }
 0x1e6   : > { %v1319_v7 = vpop.f32.mrf.mxu1 }
 0x1e7   : > { %v1320_v9 = vadd.f32 %v4075_v19, %v1319_v7  ;;  %1964 = vmatmul.bf16.vlgmr.msra.gmra.mxu3 %v1876_v5  ;;  %v1698_v12 = vmax.f32 %v1622_v8, 0.0 }
 0x1e9   : > { %v1368_v11 = vmax.f32 %v1320_v9, 0.0  ;;  %v1730_v21 = vpack.c.bf16 %v1698_v12, %v1698_v12 }
 0x1eb   : > { %v3641_v13 = vpack.c.bf16 %v1368_v11, %v1367_v4  ;;  %v1400_v14 = vpack.c.bf16 %v1368_v11, %v1368_v11  ;;  %v1846_v28 = vunpack.c.l.b16 %v1730_v21 }
 0x1ec   : > { %v1623_v15 = vpop.f32.mrf.mxu2 }
 0x1ed   : > { %3772 = vst [vmem:[%s4085_s24 + $0x50] sm:$0xff] %v3641_v13   ;;  %v1624_v16 = vadd.f32 %v4171_v43, %v1623_v15  ;;  %v1516_v18 = vunpack.c.l.b16 %v1400_v14 }
 0x1ee   : > { %v1322_v20 = vpop.f32.mrf.mxu1 }
 0x1ef   : > { %v1699_v22 = vmax.f32 %v1624_v16, 0.0  ;;  %v1537_v23 = vpack.c.b16 %v1516_v18, %v1515_v17  ;;  %v1323_v26 = vadd.f32 %v4075_v19, %v1322_v20 }
 0x1f1   : > { %v3676_v25 = vpack.c.bf16 %v1699_v22, %v1698_v12  ;;  %1665 = vmatmul.bf16.gmra.mxu2 %v1537_v23  ;;  %v1731_v27 = vpack.c.bf16 %v1699_v22, %v1699_v22  ;;  %v1369_v31 = vmax.f32 %v1323_v26, 0.0 }
 0x1f3   : > { %3778 = vst [vmem:[%s4184_s23 + $0x8] sm:$0xff] %v3676_v25   ;;  %v1847_v29 = vunpack.c.l.b16 %v1731_v27  ;;  %v1401_v36 = vpack.c.bf16 %v1369_v31, %v1369_v31 }
 0x1f4   : > { %v1626_v30 = vpop.f32.mrf.mxu2 }
 0x1f5   : > { %v1877_v32 = vpack.c.b16 %v1847_v29, %v1846_v28  ;;  %v1627_v34 = vadd.f32 %v4171_v43, %v1626_v30  ;;  %v1517_v44 = vunpack.c.l.b16 %v1401_v36 }
 0x1f6   : > { %v1324_v33 = vpop.f32.mrf.mxu1 }
 0x1f7   : > { %v1325_v35 = vadd.f32 %v4075_v19, %v1324_v33  ;;  %1969 = vmatmul.bf16.gmra.mxu3 %v1877_v32  ;;  %v1700_v38 = vmax.f32 %v1627_v34, 0.0  ;;  %v3477_v33 = vld [vmem:[%s4607_s9 + $0x8] sm:$0xff] }
 0x1f8   : > { %2167 = vmatpush.bf16.msrb.mxu0 %v3477_v33 }
 0x1f9   : > { %v1370_v37 = vmax.f32 %v1325_v35, 0.0  ;;  %v1732_v48 = vpack.c.bf16 %v1700_v38, %v1700_v38 }
 0x1fb   : > { %v3646_v39 = vpack.c.bf16 %v1370_v37, %v1369_v31  ;;  %v1402_v40 = vpack.c.bf16 %v1370_v37, %v1370_v37  ;;  %v1848_v54 = vunpack.c.l.b16 %v1732_v48 }
 0x1fc   : > { %v1628_v41 = vpop.f32.mrf.mxu2 }
 0x1fd   : > { %3773 = vst [vmem:[%s4085_s24 + $0x58] sm:$0xff] %v3646_v39   ;;  %v1629_v42 = vadd.f32 %v4171_v43, %v1628_v41  ;;  %v1518_v45 = vunpack.c.l.b16 %v1402_v40 }
 0x1fe   : > { %v1327_v47 = vpop.f32.mrf.mxu1 }
 0x1ff   : > { %v1701_v49 = vmax.f32 %v1629_v42, 0.0  ;;  %v1538_v50 = vpack.c.b16 %v1518_v45, %v1517_v44  ;;  %v1328_v52 = vadd.f32 %v4075_v19, %v1327_v47  ;;  %v3489_v44 = vld [vmem:[%s4609_s11 + $0x28] sm:$0xff] }
 0x200   : > { %2368 = vmatpush.bf16.msrb.mxu1 %v3489_v44 }
 0x201   : > { %v3681_v51 = vpack.c.bf16 %v1701_v49, %v1700_v38  ;;  %1670 = vmatmul.bf16.gmra.mxu2 %v1538_v50  ;;  %v1733_v53 = vpack.c.bf16 %v1701_v49, %v1701_v49  ;;  %v1371_v57 = vmax.f32 %v1328_v52, 0.0 }
 0x203   : > { %3779 = vst [vmem:[%s4184_s23 + $0x10] sm:$0xff] %v3681_v51   ;;  %v1849_v55 = vunpack.c.l.b16 %v1733_v53  ;;  %v1403_v63 = vpack.c.bf16 %v1371_v57, %v1371_v57 }
 0x204   : > { %v1631_v56 = vpop.f32.mrf.mxu2 }
 0x205   : > { %v1878_v58 = vpack.c.b16 %v1849_v55, %v1848_v54  ;;  %v1632_v61 = vadd.f32 %v4171_v43, %v1631_v56  ;;  %v1519_v4 = vunpack.c.l.b16 %v1403_v63 }
 0x206   : > { %v1329_v60 = vpop.f32.mrf.mxu1 }
 0x207   : > { %v1330_v62 = vadd.f32 %v4075_v19, %v1329_v60  ;;  %1974 = vmatmul.bf16.gmra.mxu3 %v1878_v58  ;;  %v1702_v1 = vmax.f32 %v1632_v61, 0.0 }
 0x209   : > { %v1372_v0 = vmax.f32 %v1330_v62, 0.0  ;;  %v1734_v8 = vpack.c.bf16 %v1702_v1, %v1702_v1 }
 0x20b   : > { %v1404_v24 = vpack.c.bf16 %v1372_v0, %v1372_v0  ;;  %v3651_v2 = vpack.c.bf16 %v1372_v0, %v1371_v57  ;;  %v1850_v14 = vunpack.c.l.b16 %v1734_v8 }
 0x20c   : > { %v1633_v3 = vpop.f32.mrf.mxu2 }
 0x20d   : > { %3774 = vst [vmem:[%s4085_s24 + $0x60] sm:$0xff] %v3651_v2   ;;  %v1520_v5 = vunpack.c.l.b16 %v1404_v24  ;;  %v1634_v6 = vadd.f32 %v4171_v43, %v1633_v3 }
 0x20e   : > { %v1332_v7 = vpop.f32.mrf.mxu1 }
 0x20f   : > { %v1703_v9 = vmax.f32 %v1634_v6, 0.0  ;;  %v1539_v10 = vpack.c.b16 %v1520_v5, %v1519_v4  ;;  %v1333_v12 = vadd.f32 %v4075_v19, %v1332_v7 }
 0x211   : > { %v3686_v11 = vpack.c.bf16 %v1703_v9, %v1702_v1  ;;  %1675 = vmatmul.bf16.gmra.mxu2 %v1539_v10  ;;  %v1735_v13 = vpack.c.bf16 %v1703_v9, %v1703_v9  ;;  %v1373_v17 = vmax.f32 %v1333_v12, 0.0  ;;  %v3476_v12 = vld [vmem:[%s4607_s9] sm:$0xff] }
 0x212   : > { %2168 = vmatpush.bf16.msrb.mxu0 %v3476_v12 }
 0x213   : > { %3780 = vst [vmem:[%s4184_s23 + $0x18] sm:$0xff] %v3686_v11   ;;  %v1851_v15 = vunpack.c.l.b16 %v1735_v13  ;;  %v1405_v23 = vpack.c.bf16 %v1373_v17, %v1373_v17 }
 0x214   : > { %v1636_v16 = vpop.f32.mrf.mxu2 }
 0x215   : > { %v1879_v18 = vpack.c.b16 %v1851_v15, %v1850_v14  ;;  %v1637_v21 = vadd.f32 %v4171_v43, %v1636_v16  ;;  %v1521_v30 = vunpack.c.l.b16 %v1405_v23 }
 0x216   : > { %v1334_v20 = vpop.f32.mrf.mxu1 }
 0x217   : > { %v1335_v22 = vadd.f32 %v4075_v19, %v1334_v20  ;;  %1979 = vmatmul.bf16.gmra.mxu3 %v1879_v18  ;;  %v1704_v26 = vmax.f32 %v1637_v21, 0.0 }
 0x219   : > { %v1374_v25 = vmax.f32 %v1335_v22, 0.0  ;;  %v1736_v35 = vpack.c.bf16 %v1704_v26, %v1704_v26 }
 0x21b   : > { %v1406_v27 = vpack.c.bf16 %v1374_v25, %v1374_v25  ;;  %v3656_v28 = vpack.c.bf16 %v1374_v25, %v1373_v17  ;;  %v1852_v41 = vunpack.c.l.b16 %v1736_v35 }
 0x21c   : > { %v1638_v29 = vpop.f32.mrf.mxu2 }
 0x21d   : > { %3775 = vst [vmem:[%s4085_s24 + $0x68] sm:$0xff] %v3656_v28   ;;  %v1522_v31 = vunpack.c.l.b16 %v1406_v27  ;;  %v1639_v32 = vadd.f32 %v4171_v43, %v1638_v29  ;;  %v3488_v28 = vld [vmem:[%s4609_s11 + $0x20] sm:$0xff] }
 0x21e   : > { %v1337_v34 = vpop.f32.mrf.mxu1  ;;  %2369 = vmatpush.bf16.msrb.mxu1 %v3488_v28 }
 0x21f   : > { %v1705_v36 = vmax.f32 %v1639_v32, 0.0  ;;  %v1540_v37 = vpack.c.b16 %v1522_v31, %v1521_v30  ;;  %v1338_v39 = vadd.f32 %v4075_v19, %v1337_v34 }
 0x221   : > { %v3691_v38 = vpack.c.bf16 %v1705_v36, %v1704_v26  ;;  %1680 = vmatmul.bf16.gmra.mxu2 %v1540_v37  ;;  %v1737_v40 = vpack.c.bf16 %v1705_v36, %v1705_v36  ;;  %v1375_v46 = vmax.f32 %v1338_v39, 0.0 }
 0x223   : > { %3781 = vst [vmem:[%s4184_s23 + $0x20] sm:$0xff] %v3691_v38   ;;  %v1853_v42 = vunpack.c.l.b16 %v1737_v40  ;;  %v1407_v51 = vpack.c.bf16 %v1375_v46, %v1375_v46 }
 0x224   : > { %v1641_v45 = vpop.f32.mrf.mxu2 }
 0x225   : > { %v1880_v47 = vpack.c.b16 %v1853_v42, %v1852_v41  ;;  %v1642_v49 = vadd.f32 %v4171_v43, %v1641_v45  ;;  %v1523_v57 = vunpack.c.l.b16 %v1407_v51 }
 0x226   : > { %v1339_v48 = vpop.f32.mrf.mxu1 }
 0x227   : > { %v1340_v50 = vadd.f32 %v4075_v19, %v1339_v48  ;;  %1984 = vmatmul.bf16.gmra.mxu3 %v1880_v47  ;;  %v1706_v53 = vmax.f32 %v1642_v49, 0.0 }
 0x229   : > { %v1376_v52 = vmax.f32 %v1340_v50, 0.0  ;;  %v1738_v61 = vpack.c.bf16 %v1706_v53, %v1706_v53 }
 0x22b   : > { %v1408_v54 = vpack.c.bf16 %v1376_v52, %v1376_v52  ;;  %v3661_v55 = vpack.c.bf16 %v1376_v52, %v1375_v46  ;;  %v1854_v2 = vunpack.c.l.b16 %v1738_v61 }
 0x22c   : > { %v1643_v56 = vpop.f32.mrf.mxu2 }
 0x22d   : > { %3776 = vst [vmem:[%s4085_s24 + $0x70] sm:$0xff] %v3661_v55   ;;  %v1524_v58 = vunpack.c.l.b16 %v1408_v54  ;;  %v1644_v59 = vadd.f32 %v4171_v43, %v1643_v56  ;;  %v3487_v56 = vld [vmem:[%s4609_s11 + $0x18] sm:$0xff] }
 0x22e   : > { %v1342_v60 = vpop.f32.mrf.mxu1  ;;  %2370 = vmatpush.bf16.msrb.mxu1 %v3487_v56 }
 0x22f   : > { %v1707_v62 = vmax.f32 %v1644_v59, 0.0  ;;  %v1541_v63 = vpack.c.b16 %v1524_v58, %v1523_v57  ;;  %v1343_v1 = vadd.f32 %v4075_v19, %v1342_v60  ;;  %v4258_v58 = vld [vmem:[%s4606_s8] ss:$0 sm:$0xff] }
 0x231   : > { %v3696_v0 = vpack.c.bf16 %v1707_v62, %v1706_v53  ;;  %1685 = vmatmul.bf16.gmra.mxu2 %v1541_v63  ;;  %v1739_v24 = vpack.c.bf16 %v1707_v62, %v1707_v62  ;;  %v1377_v5 = vmax.f32 %v1343_v1, 0.0 }
 0x233   : > { %3782 = vst [vmem:[%s4184_s23 + $0x28] sm:$0xff] %v3696_v0   ;;  %v1855_v3 = vunpack.c.l.b16 %v1739_v24  ;;  %v1409_v10 = vpack.c.bf16 %v1377_v5, %v1377_v5 }
 0x234   : > { %v1646_v4 = vpop.f32.mrf.mxu2 }
 0x235   : > { %v1881_v6 = vpack.c.b16 %v1855_v3, %v1854_v2  ;;  %v1647_v8 = vadd.f32 %v4171_v43, %v1646_v4  ;;  %v1525_v17 = vunpack.c.l.b16 %v1409_v10 }
 0x236   : > { %v1344_v7 = vpop.f32.mrf.mxu1 }
 0x237   : > { %v1345_v9 = vadd.f32 %v4075_v19, %v1344_v7  ;;  %1989 = vmatmul.bf16.gmra.mxu3 %v1881_v6  ;;  %v1708_v13 = vmax.f32 %v1647_v8, 0.0  ;;  %v3499_v7 = vld [vmem:[%s4611_s13 + $0x38] sm:$0xff] }
 0x238   : > { %2571 = vmatpush.bf16.msrb.mxu2 %v3499_v7 }
 0x239   : > { %v1378_v11 = vmax.f32 %v1345_v9, 0.0  ;;  %v1740_v21 = vpack.c.bf16 %v1708_v13, %v1708_v13 }
 0x23b   : > { %v1410_v14 = vpack.c.bf16 %v1378_v11, %v1378_v11  ;;  %v3666_v15 = vpack.c.bf16 %v1378_v11, %v1377_v5  ;;  %v1856_v26 = vunpack.c.l.b16 %v1740_v21 }
 0x23c   : > { %v1648_v16 = vpop.f32.mrf.mxu2 }
 0x23d   : > { %3777 = vst [vmem:[%s4085_s24 + $0x78] sm:$0xff] %v3666_v15   ;;  %v1526_v18 = vunpack.c.l.b16 %v1410_v14  ;;  %v1649_v20 = vadd.f32 %v4171_v43, %v1648_v16 }
 0x23f   : > { %v1709_v19 = vmax.f32 %v1649_v20, 0.0  ;;  %v1542_v22 = vpack.c.b16 %v1526_v18, %v1525_v17 }
 0x241   : > { %v3701_v23 = vpack.c.bf16 %v1709_v19, %v1708_v13  ;;  %1690 = vmatmul.bf16.gmra.mxu2 %v1542_v22  ;;  %v1741_v25 = vpack.c.bf16 %v1709_v19, %v1709_v19 }
 0x243   : > { %3783 = vst [vmem:[%s4184_s23 + $0x30] sm:$0xff] %v3701_v23   ;;  %v1857_v27 = vunpack.c.l.b16 %v1741_v25 }
 0x244   : > { %v1651_v29 = vpop.f32.mrf.mxu2 }
 0x245   : > { %v1882_v30 = vpack.c.b16 %v1857_v27, %v1856_v26  ;;  %v1652_v31 = vadd.f32 %v4171_v43, %v1651_v29  ;;  %v3486_v29 = vld [vmem:[%s4609_s11 + $0x10] sm:$0xff] }
 0x246   : > { %2371 = vmatpush.bf16.msrb.mxu1 %v3486_v29 }
 0x247   : > { %1994 = vmatmul.bf16.gmra.mxu3 %v1882_v30  ;;  %v1710_v32 = vmax.f32 %v1652_v31, 0.0 }
 0x249   : > { %v1742_v35 = vpack.c.bf16 %v1710_v32, %v1710_v32 }
 0x24b   : > { %v1858_v39 = vunpack.c.l.b16 %v1742_v35 }
 0x24c   : > { %v1653_v33 = vpop.f32.mrf.mxu2 }
 0x24d   : > { %v1654_v34 = vadd.f32 %v4171_v43, %v1653_v33 }
 0x24f   : > { %v1711_v36 = vmax.f32 %v1654_v34, 0.0 }
 0x251   : > { %v3706_v37 = vpack.c.bf16 %v1711_v36, %v1710_v32  ;;  %v1743_v38 = vpack.c.bf16 %v1711_v36, %v1711_v36 }
 0x253   : > { %3784 = vst [vmem:[%s4184_s23 + $0x38] sm:$0xff] %v3706_v37   ;;  %v1859_v40 = vunpack.c.l.b16 %v1743_v38 }
 0x254   : > { %v1656_v41 = vpop.f32.mrf.mxu2 }
 0x255   : > { %v1883_v42 = vpack.c.b16 %v1859_v40, %v1858_v39  ;;  %v1657_v44 = vadd.f32 %v4171_v43, %v1656_v41 }
 0x257   : > { %1999 = vmatmul.bf16.gmra.mxu3 %v1883_v42  ;;  %v1712_v45 = vmax.f32 %v1657_v44, 0.0 }
 0x259   : > { %v1744_v48 = vpack.c.bf16 %v1712_v45, %v1712_v45 }
 0x25b   : > { %v1860_v52 = vunpack.c.l.b16 %v1744_v48 }
 0x25c   : > { %v1658_v46 = vpop.f32.mrf.mxu2 }
 0x25d   : > { %v1659_v47 = vadd.f32 %v4171_v43, %v1658_v46 }
 0x25f   : > { %v1713_v49 = vmax.f32 %v1659_v47, 0.0 }
 0x261   : > { %v3711_v50 = vpack.c.bf16 %v1713_v49, %v1712_v45  ;;  %v1745_v51 = vpack.c.bf16 %v1713_v49, %v1713_v49  ;;  %v3498_v45 = vld [vmem:[%s4611_s13 + $0x30] sm:$0xff] }
 0x262   : > { %2572 = vmatpush.bf16.msrb.mxu2 %v3498_v45 }
 0x263   : > { %3785 = vst [vmem:[%s4184_s23 + $0x40] sm:$0xff] %v3711_v50   ;;  %v1861_v53 = vunpack.c.l.b16 %v1745_v51 }
 0x264   : > { %v1661_v54 = vpop.f32.mrf.mxu2 }
 0x265   : > { %v1884_v55 = vpack.c.b16 %v1861_v53, %v1860_v52  ;;  %v1662_v57 = vadd.f32 %v4171_v43, %v1661_v54 }
 0x267   : > { %2004 = vmatmul.bf16.gmra.mxu3 %v1884_v55  ;;  %v1714_v60 = vmax.f32 %v1662_v57, 0.0 }
 0x269   : > { %v1746_v0 = vpack.c.bf16 %v1714_v60, %v1714_v60 }
 0x26a   : > { %v1965_v59 = vpop.f32.mrf.mxu3 }
 0x26b   : > { %v1966_v61 = vadd.f32 %v4258_v58, %v1965_v59  ;;  %v1862_v5 = vunpack.c.l.b16 %v1746_v0 }
 0x26c   : > { %v1663_v62 = vpop.f32.mrf.mxu2 }
 0x26d   : > { %2045 = vst [vmem:[%s4265_s30] sm:$0xff] %v1966_v61  ;;  %v1664_v63 = vadd.f32 %v4171_v43, %v1663_v62 }
 0x26f   : > { %v1715_v1 = vmax.f32 %v1664_v63, 0.0 }
 0x271   : > { %v3716_v24 = vpack.c.bf16 %v1715_v1, %v1714_v60  ;;  %v1747_v2 = vpack.c.bf16 %v1715_v1, %v1715_v1 }
 0x272   : > { %v1967_v3 = vpop.f32.mrf.mxu3 }
 0x273   : > { %3786 = vst [vmem:[%s4184_s23 + $0x48] sm:$0xff] %v3716_v24   ;;  %v1968_v4 = vadd.f32 %v4258_v58, %v1967_v3  ;;  %v1863_v6 = vunpack.c.l.b16 %v1747_v2  ;;  %v3485_v2 = vld [vmem:[%s4609_s11 + $0x8] sm:$0xff] }
 0x274   : > { %v1666_v8 = vpop.f32.mrf.mxu2  ;;  %2372 = vmatpush.bf16.msrb.mxu1 %v3485_v2 }
 0x275   : > { %2046 = vst [vmem:[%s4265_s30 + $0x8] sm:$0xff] %v1968_v4  ;;  %v2077_v9 = vpack.c.bf16 %v1968_v4, %v1966_v61  ;;  %v1885_v10 = vpack.c.b16 %v1863_v6, %v1862_v5  ;;  %v1667_v11 = vadd.f32 %v4171_v43, %v1666_v8 }
 0x277   : > { %2009 = vmatmul.bf16.gmra.mxu3 %v1885_v10  ;;  %2169 = vmatmul.bf16.vlgmr.msrb.gmra.mxu0 %v2077_v9  ;;  %v1716_v13 = vmax.f32 %v1667_v11, 0.0 }
 0x279   : > { %v1748_v17 = vpack.c.bf16 %v1716_v13, %v1716_v13 }
 0x27a   : > { %v1970_v12 = vpop.f32.mrf.mxu3 }
 0x27b   : > { %v1971_v14 = vadd.f32 %v4258_v58, %v1970_v12  ;;  %v1864_v23 = vunpack.c.l.b16 %v1748_v17  ;;  %v3497_v17 = vld [vmem:[%s4611_s13 + $0x28] sm:$0xff] }
 0x27c   : > { %v1668_v15 = vpop.f32.mrf.mxu2  ;;  %2573 = vmatpush.bf16.msrb.mxu2 %v3497_v17 }
 0x27d   : > { %2047 = vst [vmem:[%s4265_s30 + $0x10] sm:$0xff] %v1971_v14  ;;  %v1669_v16 = vadd.f32 %v4171_v43, %v1668_v15 }
 0x27f   : > { %v1717_v18 = vmax.f32 %v1669_v16, 0.0 }
 0x281   : > { %v3721_v20 = vpack.c.bf16 %v1717_v18, %v1716_v13  ;;  %v1749_v21 = vpack.c.bf16 %v1717_v18, %v1717_v18 }
 0x282   : > { %v1972_v19 = vpop.f32.mrf.mxu3 }
 0x283   : > { %3787 = vst [vmem:[%s4184_s23 + $0x50] sm:$0xff] %v3721_v20   ;;  %v1973_v22 = vadd.f32 %v4258_v58, %v1972_v19  ;;  %v1865_v25 = vunpack.c.l.b16 %v1749_v21 }
 0x284   : > { %v1671_v26 = vpop.f32.mrf.mxu2 }
 0x285   : > { %2048 = vst [vmem:[%s4265_s30 + $0x18] sm:$0xff] %v1973_v22  ;;  %v2078_v27 = vpack.c.bf16 %v1973_v22, %v1971_v14  ;;  %v1886_v28 = vpack.c.b16 %v1865_v25, %v1864_v23  ;;  %v1672_v30 = vadd.f32 %v4171_v43, %v1671_v26 }
 0x287   : > { %2014 = vmatmul.bf16.gmra.mxu3 %v1886_v28  ;;  %2174 = vmatmul.bf16.gmra.mxu0 %v2078_v27  ;;  %v1718_v32 = vmax.f32 %v1672_v30, 0.0 }
 0x289   : > { %v1750_v36 = vpack.c.bf16 %v1718_v32, %v1718_v32 }
 0x28a   : > { %v1975_v31 = vpop.f32.mrf.mxu3 }
 0x28b   : > { %v1976_v33 = vadd.f32 %v4258_v58, %v1975_v31  ;;  %v1866_v42 = vunpack.c.l.b16 %v1750_v36 }
 0x28c   : > { %v1673_v34 = vpop.f32.mrf.mxu2 }
 0x28d   : > { %2049 = vst [vmem:[%s4265_s30 + $0x20] sm:$0xff] %v1976_v33  ;;  %v1674_v35 = vadd.f32 %v4171_v43, %v1673_v34 }
 0x28f   : > { %v1719_v37 = vmax.f32 %v1674_v35, 0.0 }
 0x291   : > { %v3726_v38 = vpack.c.bf16 %v1719_v37, %v1718_v32  ;;  %v1751_v39 = vpack.c.bf16 %v1719_v37, %v1719_v37 }
 0x292   : > { %v1977_v40 = vpop.f32.mrf.mxu3 }
 0x293   : > { %3788 = vst [vmem:[%s4184_s23 + $0x58] sm:$0xff] %v3726_v38   ;;  %v1978_v41 = vadd.f32 %v4258_v58, %v1977_v40  ;;  %v1867_v44 = vunpack.c.l.b16 %v1751_v39  ;;  %v3484_v39 = vld [vmem:[%s4609_s11] sm:$0xff] }
 0x294   : > { %v1676_v46 = vpop.f32.mrf.mxu2  ;;  %2373 = vmatpush.bf16.msrb.mxu1 %v3484_v39 }
 0x295   : > { %2050 = vst [vmem:[%s4265_s30 + $0x28] sm:$0xff] %v1978_v41  ;;  %v2079_v47 = vpack.c.bf16 %v1978_v41, %v1976_v33  ;;  %v1887_v48 = vpack.c.b16 %v1867_v44, %v1866_v42  ;;  %v1677_v49 = vadd.f32 %v4171_v43, %v1676_v46 }
 0x297   : > { %2019 = vmatmul.bf16.gmra.mxu3 %v1887_v48  ;;  %2179 = vmatmul.bf16.gmra.mxu0 %v2079_v47  ;;  %v1720_v51 = vmax.f32 %v1677_v49, 0.0  ;;  %v3496_v47 = vld [vmem:[%s4611_s13 + $0x20] sm:$0xff] }
 0x298   : > { %2574 = vmatpush.bf16.msrb.mxu2 %v3496_v47 }
 0x299   : > { %v1752_v55 = vpack.c.bf16 %v1720_v51, %v1720_v51 }
 0x29a   : > { %v1980_v50 = vpop.f32.mrf.mxu3 }
 0x29b   : > { %v1981_v52 = vadd.f32 %v4258_v58, %v1980_v50  ;;  %v1868_v61 = vunpack.c.l.b16 %v1752_v55 }
 0x29c   : > { %v1678_v53 = vpop.f32.mrf.mxu2 }
 0x29d   : > { %2051 = vst [vmem:[%s4265_s30 + $0x30] sm:$0xff] %v1981_v52  ;;  %v1679_v54 = vadd.f32 %v4171_v43, %v1678_v53 }
 0x29f   : > { %v1721_v56 = vmax.f32 %v1679_v54, 0.0 }
 0x2a1   : > { %v1753_v57 = vpack.c.bf16 %v1721_v56, %v1721_v56  ;;  %v3731_v59 = vpack.c.bf16 %v1721_v56, %v1720_v51 }
 0x2a2   : > { %v1982_v60 = vpop.f32.mrf.mxu3 }
 0x2a3   : > { %3789 = vst [vmem:[%s4184_s23 + $0x60] sm:$0xff] %v3731_v59   ;;  %v1869_v62 = vunpack.c.l.b16 %v1753_v57  ;;  %v1983_v63 = vadd.f32 %v4258_v58, %v1982_v60 }
 0x2a4   : > { %v1681_v0 = vpop.f32.mrf.mxu2 }
 0x2a5   : > { %2052 = vst [vmem:[%s4265_s30 + $0x38] sm:$0xff] %v1983_v63  ;;  %v2080_v1 = vpack.c.bf16 %v1983_v63, %v1981_v52  ;;  %v1888_v24 = vpack.c.b16 %v1869_v62, %v1868_v61  ;;  %v1682_v3 = vadd.f32 %v4171_v43, %v1681_v0 }
 0x2a7   : > { %2024 = vmatmul.bf16.gmra.mxu3 %v1888_v24  ;;  %2184 = vmatmul.bf16.gmra.mxu0 %v2080_v1  ;;  %v1722_v5 = vmax.f32 %v1682_v3, 0.0  ;;  %v3495_v1 = vld [vmem:[%s4611_s13 + $0x18] sm:$0xff] }
 0x2a8   : > { %2575 = vmatpush.bf16.msrb.mxu2 %v3495_v1 }
 0x2a9   : > { %v1754_v9 = vpack.c.bf16 %v1722_v5, %v1722_v5 }
 0x2aa   : > { %v1985_v4 = vpop.f32.mrf.mxu3 }
 0x2ab   : > { %v1986_v6 = vadd.f32 %v4258_v58, %v1985_v4  ;;  %v1870_v14 = vunpack.c.l.b16 %v1754_v9 }
 0x2ac   : > { %v1683_v7 = vpop.f32.mrf.mxu2 }
 0x2ad   : > { %2053 = vst [vmem:[%s4265_s30 + $0x40] sm:$0xff] %v1986_v6  ;;  %v1684_v8 = vadd.f32 %v4171_v43, %v1683_v7 }
 0x2af   : > { %v1723_v10 = vmax.f32 %v1684_v8, 0.0 }
 0x2b1   : > { %v1755_v11 = vpack.c.bf16 %v1723_v10, %v1723_v10  ;;  %v3736_v12 = vpack.c.bf16 %v1723_v10, %v1722_v5  ;;  %v4350_v5 = vld [vmem:[%s4608_s10] ss:$0 sm:$0xff] }
 0x2b2   : > { %v1987_v13 = vpop.f32.mrf.mxu3 }
 0x2b3   : > { %3790 = vst [vmem:[%s4184_s23 + $0x68] sm:$0xff] %v3736_v12   ;;  %v1871_v15 = vunpack.c.l.b16 %v1755_v11  ;;  %v1988_v16 = vadd.f32 %v4258_v58, %v1987_v13  ;;  %v3507_v13 = vld [vmem:[%s4613_s15 + $0x38] sm:$0xff] }
 0x2b4   : > { %v1686_v18 = vpop.f32.mrf.mxu2  ;;  %2776 = vmatpush.bf16.msrb.mxu3 %v3507_v13 }
 0x2b5   : > { %2054 = vst [vmem:[%s4265_s30 + $0x48] sm:$0xff] %v1988_v16  ;;  %v2081_v20 = vpack.c.bf16 %v1988_v16, %v1986_v6  ;;  %v1889_v21 = vpack.c.b16 %v1871_v15, %v1870_v14  ;;  %v1687_v19 = vadd.f32 %v4171_v43, %v1686_v18 }
 0x2b7   : > { %2029 = vmatmul.bf16.gmra.mxu3 %v1889_v21  ;;  %2189 = vmatmul.bf16.gmra.mxu0 %v2081_v20  ;;  %v1724_v23 = vmax.f32 %v1687_v19, 0.0 }
 0x2b9   : > { %v1756_v28 = vpack.c.bf16 %v1724_v23, %v1724_v23 }
 0x2ba   : > { %v1990_v22 = vpop.f32.mrf.mxu3 }
 0x2bb   : > { %v1991_v25 = vadd.f32 %v4258_v58, %v1990_v22  ;;  %v1872_v33 = vunpack.c.l.b16 %v1756_v28 }
 0x2bc   : > { %v1688_v26 = vpop.f32.mrf.mxu2 }
 0x2bd   : > { %2055 = vst [vmem:[%s4265_s30 + $0x50] sm:$0xff] %v1991_v25  ;;  %v1689_v27 = vadd.f32 %v4171_v43, %v1688_v26 }
 0x2bf   : > { %v1725_v29 = vmax.f32 %v1689_v27, 0.0  ;;  %v3494_v27 = vld [vmem:[%s4611_s13 + $0x10] sm:$0xff] }
 0x2c0   : > { %2576 = vmatpush.bf16.msrb.mxu2 %v3494_v27 }
 0x2c1   : > { %v1757_v30 = vpack.c.bf16 %v1725_v29, %v1725_v29  ;;  %v3741_v31 = vpack.c.bf16 %v1725_v29, %v1724_v23 }
 0x2c2   : > { %v1992_v32 = vpop.f32.mrf.mxu3 }
 0x2c3   : > { %3791 = vst [vmem:[%s4184_s23 + $0x70] sm:$0xff] %v3741_v31   ;;  %v1873_v34 = vunpack.c.l.b16 %v1757_v30  ;;  %v1993_v35 = vadd.f32 %v4258_v58, %v1992_v32 }
 0x2c4   : > { %v1691_v36 = vpop.f32.mrf.mxu2 }
 0x2c5   : > { %2056 = vst [vmem:[%s4265_s30 + $0x58] sm:$0xff] %v1993_v35  ;;  %v2082_v37 = vpack.c.bf16 %v1993_v35, %v1991_v25  ;;  %v1890_v38 = vpack.c.b16 %v1873_v34, %v1872_v33  ;;  %v1692_v40 = vadd.f32 %v4171_v43, %v1691_v36 }
 0x2c7   : > { %2034 = vmatmul.bf16.gmra.mxu3 %v1890_v38  ;;  %2194 = vmatmul.bf16.gmra.mxu0 %v2082_v37  ;;  %v1726_v42 = vmax.f32 %v1692_v40, 0.0 }
 0x2c9   : > { %v1758_v48 = vpack.c.bf16 %v1726_v42, %v1726_v42 }
 0x2ca   : > { %v1995_v41 = vpop.f32.mrf.mxu3 }
 0x2cb   : > { %v1996_v44 = vadd.f32 %v4258_v58, %v1995_v41  ;;  %v1874_v53 = vunpack.c.l.b16 %v1758_v48  ;;  %v3506_v41 = vld [vmem:[%s4613_s15 + $0x30] sm:$0xff] }
 0x2cc   : > { %v1693_v45 = vpop.f32.mrf.mxu2  ;;  %2777 = vmatpush.bf16.msrb.mxu3 %v3506_v41 }
 0x2cd   : > { %2057 = vst [vmem:[%s4265_s30 + $0x60] sm:$0xff] %v1996_v44  ;;  %v1694_v46 = vadd.f32 %v4171_v43, %v1693_v45 }
 0x2cf   : > { %v1727_v49 = vmax.f32 %v1694_v46, 0.0 }
 0x2d1   : > { %v1759_v50 = vpack.c.bf16 %v1727_v49, %v1727_v49  ;;  %v3746_v51 = vpack.c.bf16 %v1727_v49, %v1726_v42 }
 0x2d2   : > { %v1997_v52 = vpop.f32.mrf.mxu3 }
 0x2d3   : > { %3792 = vst [vmem:[%s4184_s23 + $0x78] sm:$0xff] %v3746_v51   ;;  %v1875_v54 = vunpack.c.l.b16 %v1759_v50  ;;  %v1998_v55 = vadd.f32 %v4258_v58, %v1997_v52  ;;  %s4515_s23 = scalar_lea.vmem %s4615_s17, %s3097_s28 }
 0x2d5   : > { %2058 = vst [vmem:[%s4265_s30 + $0x68] sm:$0xff] %v1998_v55  ;;  %v2083_v43 = vpack.c.bf16 %v1998_v55, %v1996_v44  ;;  %v1891_v56 = vpack.c.b16 %v1875_v54, %v1874_v53  ;;  %v3493_v55 = vld [vmem:[%s4611_s13 + $0x8] sm:$0xff] }
 0x2d6   : > { %2577 = vmatpush.bf16.msrb.mxu2 %v3493_v55 }
 0x2d7   : > { %2039 = vmatmul.bf16.gmra.mxu3 %v1891_v56  ;;  %2199 = vmatmul.bf16.gmra.mxu0 %v2083_v43 }
 0x2da   : > { %v2000_v57 = vpop.f32.mrf.mxu3 }
 0x2db   : > { %v2001_v59 = vadd.f32 %v4258_v58, %v2000_v57 }
 0x2dd   : > { %2059 = vst [vmem:[%s4265_s30 + $0x70] sm:$0xff] %v2001_v59 }
 0x2e2   : > { %v2002_v60 = vpop.f32.mrf.mxu3 }
 0x2e3   : > { %v2003_v61 = vadd.f32 %v4258_v58, %v2002_v60 }
 0x2e5   : > { %2060 = vst [vmem:[%s4265_s30 + $0x78] sm:$0xff] %v2003_v61  ;;  %v2084_v62 = vpack.c.bf16 %v2003_v61, %v2001_v59 }
 0x2e7   : > { %2204 = vmatmul.bf16.gmra.mxu0 %v2084_v62 }
 0x2ea   : > { %v2005_v63 = vpop.f32.mrf.mxu3 }
 0x2eb   : > { %v2006_v0 = vadd.f32 %v4258_v58, %v2005_v63 }
 0x2ed   : > { %2061 = vst [vmem:[%s4265_s30 + $0x80] sm:$0xff] %v2006_v0 }
 0x2f2   : > { %v2007_v24 = vpop.f32.mrf.mxu3 }
 0x2f3   : > { %v2008_v2 = vadd.f32 %v4258_v58, %v2007_v24 }
 0x2f4   : > { %v2170_v3 = vpop.f32.mrf.mxu0 }
 0x2f5   : > { %2062 = vst [vmem:[%s4265_s30 + $0x88] sm:$0xff] %v2008_v2  ;;  %v2085_v4 = vpack.c.bf16 %v2008_v2, %v2006_v0  ;;  %v2171_v7 = vadd.f32 %v4350_v5, %v2170_v3  ;;  %v3505_v3 = vld [vmem:[%s4613_s15 + $0x28] sm:$0xff] }
 0x2f6   : > { %2778 = vmatpush.bf16.msrb.mxu3 %v3505_v3 }
 0x2f7   : > { %2209 = vmatmul.bf16.gmra.mxu0 %v2085_v4  ;;  %v2250_v11 = vmax.f32 %v2171_v7, 0.0 }
 0x2fa   : > { %v2010_v6 = vpop.f32.mrf.mxu3 }
 0x2fb   : > { %v2011_v8 = vadd.f32 %v4258_v58, %v2010_v6 }
 0x2fc   : > { %v2172_v9 = vpop.f32.mrf.mxu0 }
 0x2fd   : > { %2063 = vst [vmem:[%s4265_s30 + $0x90] sm:$0xff] %v2011_v8  ;;  %v2173_v10 = vadd.f32 %v4350_v5, %v2172_v9 }
 0x2ff   : > { %v2251_v12 = vmax.f32 %v2173_v10, 0.0 }
 0x301   : > { %v2282_v14 = vpack.c.bf16 %v2251_v12, %v2250_v11 }
 0x302   : > { %v2012_v15 = vpop.f32.mrf.mxu3 }
 0x303   : > { %v2013_v16 = vadd.f32 %v4258_v58, %v2012_v15  ;;  %2374 = vmatmul.bf16.vlgmr.msrb.gmra.mxu1 %v2282_v14 }
 0x304   : > { %v2175_v17 = vpop.f32.mrf.mxu0 }
 0x305   : > { %2064 = vst [vmem:[%s4265_s30 + $0x98] sm:$0xff] %v2013_v16  ;;  %v2086_v18 = vpack.c.bf16 %v2013_v16, %v2011_v8  ;;  %v2176_v21 = vadd.f32 %v4350_v5, %v2175_v17  ;;  %v3492_v17 = vld [vmem:[%s4611_s13] sm:$0xff] }
 0x306   : > { %2578 = vmatpush.bf16.msrb.mxu2 %v3492_v17 }
 0x307   : > { %2214 = vmatmul.bf16.gmra.mxu0 %v2086_v18  ;;  %v2252_v25 = vmax.f32 %v2176_v21, 0.0 }
 0x30a   : > { %v2015_v20 = vpop.f32.mrf.mxu3 }
 0x30b   : > { %v2016_v19 = vadd.f32 %v4258_v58, %v2015_v20 }
 0x30c   : > { %v2177_v22 = vpop.f32.mrf.mxu0 }
 0x30d   : > { %2065 = vst [vmem:[%s4265_s30 + $0xa0] sm:$0xff] %v2016_v19  ;;  %v2178_v23 = vadd.f32 %v4350_v5, %v2177_v22 }
 0x30f   : > { %v2253_v26 = vmax.f32 %v2178_v23, 0.0 }
 0x311   : > { %v2283_v28 = vpack.c.bf16 %v2253_v26, %v2252_v25 }
 0x312   : > { %v2017_v29 = vpop.f32.mrf.mxu3 }
 0x313   : > { %v2018_v30 = vadd.f32 %v4258_v58, %v2017_v29  ;;  %2379 = vmatmul.bf16.gmra.mxu1 %v2283_v28 }
 0x314   : > { %v2180_v31 = vpop.f32.mrf.mxu0 }
 0x315   : > { %2066 = vst [vmem:[%s4265_s30 + $0xa8] sm:$0xff] %v2018_v30  ;;  %v2087_v32 = vpack.c.bf16 %v2018_v30, %v2016_v19  ;;  %v2181_v34 = vadd.f32 %v4350_v5, %v2180_v31 }
 0x317   : > { %2219 = vmatmul.bf16.gmra.mxu0 %v2087_v32  ;;  %v2254_v38 = vmax.f32 %v2181_v34, 0.0 }
 0x31a   : > { %v2020_v33 = vpop.f32.mrf.mxu3 }
 0x31b   : > { %v2021_v35 = vadd.f32 %v4258_v58, %v2020_v33  ;;  %v3504_v33 = vld [vmem:[%s4613_s15 + $0x20] sm:$0xff] }
 0x31c   : > { %v2182_v36 = vpop.f32.mrf.mxu0  ;;  %2779 = vmatpush.bf16.msrb.mxu3 %v3504_v33 }
 0x31d   : > { %2067 = vst [vmem:[%s4265_s30 + $0xb0] sm:$0xff] %v2021_v35  ;;  %v2183_v37 = vadd.f32 %v4350_v5, %v2182_v36 }
 0x31f   : > { %v2255_v39 = vmax.f32 %v2183_v37, 0.0 }
 0x321   : > { %v2284_v40 = vpack.c.bf16 %v2255_v39, %v2254_v38 }
 0x322   : > { %v2022_v42 = vpop.f32.mrf.mxu3 }
 0x323   : > { %v2023_v44 = vadd.f32 %v4258_v58, %v2022_v42  ;;  %2384 = vmatmul.bf16.gmra.mxu1 %v2284_v40 }
 0x324   : > { %v2185_v45 = vpop.f32.mrf.mxu0 }
 0x325   : > { %2068 = vst [vmem:[%s4265_s30 + $0xb8] sm:$0xff] %v2023_v44  ;;  %v2088_v46 = vpack.c.bf16 %v2023_v44, %v2021_v35  ;;  %v2186_v48 = vadd.f32 %v4350_v5, %v2185_v45 }
 0x327   : > { %2224 = vmatmul.bf16.gmra.mxu0 %v2088_v46  ;;  %v2256_v52 = vmax.f32 %v2186_v48, 0.0 }
 0x32a   : > { %v2025_v47 = vpop.f32.mrf.mxu3 }
 0x32b   : > { %v2026_v49 = vadd.f32 %v4258_v58, %v2025_v47 }
 0x32c   : > { %v2187_v50 = vpop.f32.mrf.mxu0 }
 0x32d   : > { %2069 = vst [vmem:[%s4265_s30 + $0xc0] sm:$0xff] %v2026_v49  ;;  %v2188_v51 = vadd.f32 %v4350_v5, %v2187_v50  ;;  %v4422_v50 = vld [vmem:[%s4610_s12] ss:$0 sm:$0xff] }
 0x32f   : > { %v2257_v53 = vmax.f32 %v2188_v51, 0.0  ;;  %v3503_v51 = vld [vmem:[%s4613_s15 + $0x18] sm:$0xff] }
 0x330   : > { %2780 = vmatpush.bf16.msrb.mxu3 %v3503_v51 }
 0x331   : > { %v2285_v54 = vpack.c.bf16 %v2257_v53, %v2256_v52 }
 0x332   : > { %v2027_v43 = vpop.f32.mrf.mxu3 }
 0x333   : > { %v2028_v56 = vadd.f32 %v4258_v58, %v2027_v43  ;;  %2389 = vmatmul.bf16.gmra.mxu1 %v2285_v54 }
 0x334   : > { %v2190_v57 = vpop.f32.mrf.mxu0 }
 0x335   : > { %2070 = vst [vmem:[%s4265_s30 + $0xc8] sm:$0xff] %v2028_v56  ;;  %v2089_v59 = vpack.c.bf16 %v2028_v56, %v2026_v49  ;;  %v2191_v61 = vadd.f32 %v4350_v5, %v2190_v57 }
 0x337   : > { %2229 = vmatmul.bf16.gmra.mxu0 %v2089_v59  ;;  %v2258_v1 = vmax.f32 %v2191_v61, 0.0 }
 0x33a   : > { %v2030_v60 = vpop.f32.mrf.mxu3 }
 0x33b   : > { %v2031_v62 = vadd.f32 %v4258_v58, %v2030_v60 }
 0x33c   : > { %v2192_v63 = vpop.f32.mrf.mxu0 }
 0x33d   : > { %2071 = vst [vmem:[%s4265_s30 + $0xd0] sm:$0xff] %v2031_v62  ;;  %v2193_v0 = vadd.f32 %v4350_v5, %v2192_v63 }
 0x33f   : > { %v2259_v24 = vmax.f32 %v2193_v0, 0.0 }
 0x341   : > { %v2286_v2 = vpack.c.bf16 %v2259_v24, %v2258_v1 }
 0x342   : > { %v2032_v4 = vpop.f32.mrf.mxu3 }
 0x343   : > { %v2033_v6 = vadd.f32 %v4258_v58, %v2032_v4  ;;  %2394 = vmatmul.bf16.gmra.mxu1 %v2286_v2 }
 0x344   : > { %v2195_v7 = vpop.f32.mrf.mxu0 }
 0x345   : > { %2072 = vst [vmem:[%s4265_s30 + $0xd8] sm:$0xff] %v2033_v6  ;;  %v2090_v8 = vpack.c.bf16 %v2033_v6, %v2031_v62  ;;  %v2196_v10 = vadd.f32 %v4350_v5, %v2195_v7 }
 0x347   : > { %2234 = vmatmul.bf16.gmra.mxu0 %v2090_v8  ;;  %v2260_v14 = vmax.f32 %v2196_v10, 0.0 }
 0x34a   : > { %v2035_v9 = vpop.f32.mrf.mxu3 }
 0x34b   : > { %v2036_v11 = vadd.f32 %v4258_v58, %v2035_v9 }
 0x34c   : > { %v2197_v12 = vpop.f32.mrf.mxu0 }
 0x34d   : > { %2073 = vst [vmem:[%s4265_s30 + $0xe0] sm:$0xff] %v2036_v11  ;;  %v2198_v13 = vadd.f32 %v4350_v5, %v2197_v12 }
 0x34f   : > { %v2261_v15 = vmax.f32 %v2198_v13, 0.0 }
 0x351   : > { %v2287_v16 = vpack.c.bf16 %v2261_v15, %v2260_v14 }
 0x352   : > { %v2037_v18 = vpop.f32.mrf.mxu3 }
 0x353   : > { %v2038_v20 = vadd.f32 %v4258_v58, %v2037_v18  ;;  %2399 = vmatmul.bf16.gmra.mxu1 %v2287_v16  ;;  %v3502_v16 = vld [vmem:[%s4613_s15 + $0x10] sm:$0xff] }
 0x354   : > { %v2200_v21 = vpop.f32.mrf.mxu0  ;;  %2781 = vmatpush.bf16.msrb.mxu3 %v3502_v16 }
 0x355   : > { %2074 = vst [vmem:[%s4265_s30 + $0xe8] sm:$0xff] %v2038_v20  ;;  %v2091_v19 = vpack.c.bf16 %v2038_v20, %v2036_v11  ;;  %v2201_v23 = vadd.f32 %v4350_v5, %v2200_v21 }
 0x357   : > { %2239 = vmatmul.bf16.gmra.mxu0 %v2091_v19  ;;  %v2262_v28 = vmax.f32 %v2201_v23, 0.0 }
 0x35a   : > { %v2040_v22 = vpop.f32.mrf.mxu3 }
 0x35b   : > { %v2041_v25 = vadd.f32 %v4258_v58, %v2040_v22 }
 0x35c   : > { %v2202_v26 = vpop.f32.mrf.mxu0 }
 0x35d   : > { %2075 = vst [vmem:[%s4265_s30 + $0xf0] sm:$0xff] %v2041_v25  ;;  %v2203_v27 = vadd.f32 %v4350_v5, %v2202_v26 }
 0x35f   : > { %v2263_v29 = vmax.f32 %v2203_v27, 0.0 }
 0x361   : > { %v2288_v30 = vpack.c.bf16 %v2263_v29, %v2262_v28 }
 0x362   : > { %v2042_v31 = vpop.f32.mrf.mxu3 }
 0x363   : > { %v2043_v32 = vadd.f32 %v4258_v58, %v2042_v31  ;;  %2404 = vmatmul.bf16.gmra.mxu1 %v2288_v30 }
 0x364   : > { %v2205_v34 = vpop.f32.mrf.mxu0 }
 0x365   : > { %2076 = vst [vmem:[%s4265_s30 + $0xf8] sm:$0xff] %v2043_v32  ;;  %v2092_v35 = vpack.c.bf16 %v2043_v32, %v2041_v25  ;;  %v2206_v36 = vadd.f32 %v4350_v5, %v2205_v34 }
 0x367   : > { %2244 = vmatmul.bf16.gmra.mxu0 %v2092_v35  ;;  %v2264_v39 = vmax.f32 %v2206_v36, 0.0 }
 0x36c   : > { %v2207_v37 = vpop.f32.mrf.mxu0 }
 0x36d   : > { %v2208_v38 = vadd.f32 %v4350_v5, %v2207_v37 }
 0x36f   : > { %v2265_v40 = vmax.f32 %v2208_v38, 0.0 }
 0x371   : > { %v2289_v41 = vpack.c.bf16 %v2265_v40, %v2264_v39 }
 0x373   : > { %2409 = vmatmul.bf16.gmra.mxu1 %v2289_v41 }
 0x374   : > { %v2210_v58 = vpop.f32.mrf.mxu0 }
 0x375   : > { %v2211_v42 = vadd.f32 %v4350_v5, %v2210_v58 }
 0x377   : > { %v2266_v46 = vmax.f32 %v2211_v42, 0.0 }
 0x37c   : > { %v2212_v44 = vpop.f32.mrf.mxu0 }
 0x37d   : > { %v2213_v45 = vadd.f32 %v4350_v5, %v2212_v44 }
 0x37f   : > { %v2267_v47 = vmax.f32 %v2213_v45, 0.0 }
 0x380   : > { %v2375_v48 = vpop.f32.mrf.mxu1 }
 0x381   : > { %v2290_v49 = vpack.c.bf16 %v2267_v47, %v2266_v46  ;;  %v2376_v53 = vadd.f32 %v4422_v50, %v2375_v48  ;;  %v3501_v46 = vld [vmem:[%s4613_s15 + $0x8] sm:$0xff] }
 0x382   : > { %2782 = vmatpush.bf16.msrb.mxu3 %v3501_v46 }
 0x383   : > { %2414 = vmatmul.bf16.gmra.mxu1 %v2290_v49  ;;  %v2455_v43 = vmax.f32 %v2376_v53, 0.0 }
 0x384   : > { %v2215_v52 = vpop.f32.mrf.mxu0 }
 0x385   : > { %v2216_v56 = vadd.f32 %v4350_v5, %v2215_v52 }
 0x387   : > { %v2268_v62 = vmax.f32 %v2216_v56, 0.0 }
 0x388   : > { %v2377_v54 = vpop.f32.mrf.mxu1 }
 0x389   : > { %v2378_v55 = vadd.f32 %v4422_v50, %v2377_v54 }
 0x38b   : > { %v2456_v57 = vmax.f32 %v2378_v55, 0.0 }
 0x38c   : > { %v2217_v59 = vpop.f32.mrf.mxu0 }
 0x38d   : > { %v2487_v60 = vpack.c.bf16 %v2456_v57, %v2455_v43  ;;  %v2218_v61 = vadd.f32 %v4350_v5, %v2217_v59 }
 0x38f   : > { %v2269_v63 = vmax.f32 %v2218_v61, 0.0  ;;  %2579 = vmatmul.bf16.vlgmr.msrb.gmra.mxu2 %v2487_v60 }
 0x390   : > { %v2380_v0 = vpop.f32.mrf.mxu1 }
 0x391   : > { %v2291_v1 = vpack.c.bf16 %v2269_v63, %v2268_v62  ;;  %v2381_v2 = vadd.f32 %v4422_v50, %v2380_v0 }
 0x393   : > { %2419 = vmatmul.bf16.gmra.mxu1 %v2291_v1  ;;  %v2457_v6 = vmax.f32 %v2381_v2, 0.0 }
 0x394   : > { %v2220_v24 = vpop.f32.mrf.mxu0 }
 0x395   : > { %v2221_v7 = vadd.f32 %v4350_v5, %v2220_v24 }
 0x397   : > { %v2270_v12 = vmax.f32 %v2221_v7, 0.0 }
 0x398   : > { %v2382_v3 = vpop.f32.mrf.mxu1 }
 0x399   : > { %v2383_v4 = vadd.f32 %v4422_v50, %v2382_v3 }
 0x39b   : > { %v2458_v8 = vmax.f32 %v2383_v4, 0.0 }
 0x39c   : > { %v2222_v9 = vpop.f32.mrf.mxu0 }
 0x39d   : > { %v2223_v10 = vadd.f32 %v4350_v5, %v2222_v9  ;;  %v2488_v11 = vpack.c.bf16 %v2458_v8, %v2457_v6 }
 0x39f   : > { %v2271_v13 = vmax.f32 %v2223_v10, 0.0  ;;  %2584 = vmatmul.bf16.gmra.mxu2 %v2488_v11 }
 0x3a0   : > { %v2385_v14 = vpop.f32.mrf.mxu1 }
 0x3a1   : > { %v2292_v15 = vpack.c.bf16 %v2271_v13, %v2270_v12  ;;  %v2386_v18 = vadd.f32 %v4422_v50, %v2385_v14  ;;  %v3500_v12 = vld [vmem:[%s4613_s15] sm:$0xff] }
 0x3a2   : > { %2783 = vmatpush.bf16.msrb.mxu3 %v3500_v12 }
 0x3a3   : > { %2424 = vmatmul.bf16.gmra.mxu1 %v2292_v15  ;;  %v2459_v19 = vmax.f32 %v2386_v18, 0.0 }
 0x3a4   : > { %v2225_v17 = vpop.f32.mrf.mxu0 }
 0x3a5   : > { %v2226_v22 = vadd.f32 %v4350_v5, %v2225_v17 }
 0x3a7   : > { %v2272_v28 = vmax.f32 %v2226_v22, 0.0 }
 0x3a8   : > { %v2387_v20 = vpop.f32.mrf.mxu1 }
 0x3a9   : > { %v2388_v21 = vadd.f32 %v4422_v50, %v2387_v20 }
 0x3ab   : > { %v2460_v23 = vmax.f32 %v2388_v21, 0.0 }
 0x3ac   : > { %v2227_v25 = vpop.f32.mrf.mxu0 }
 0x3ad   : > { %v2228_v26 = vadd.f32 %v4350_v5, %v2227_v25  ;;  %v2489_v27 = vpack.c.bf16 %v2460_v23, %v2459_v19 }
 0x3af   : > { %v2273_v29 = vmax.f32 %v2228_v26, 0.0  ;;  %2589 = vmatmul.bf16.gmra.mxu2 %v2489_v27 }
 0x3b0   : > { %v2390_v30 = vpop.f32.mrf.mxu1 }
 0x3b1   : > { %v2293_v31 = vpack.c.bf16 %v2273_v29, %v2272_v28  ;;  %v2391_v33 = vadd.f32 %v4422_v50, %v2390_v30 }
 0x3b3   : > { %2429 = vmatmul.bf16.gmra.mxu1 %v2293_v31  ;;  %v2461_v36 = vmax.f32 %v2391_v33, 0.0 }
 0x3b4   : > { %v2230_v32 = vpop.f32.mrf.mxu0 }
 0x3b5   : > { %v2231_v37 = vadd.f32 %v4350_v5, %v2230_v32 }
 0x3b7   : > { %v2274_v58 = vmax.f32 %v2231_v37, 0.0 }
 0x3b8   : > { %v2392_v34 = vpop.f32.mrf.mxu1 }
 0x3b9   : > { %v2393_v35 = vadd.f32 %v4422_v50, %v2392_v34 }
 0x3bb   : > { %v2462_v38 = vmax.f32 %v2393_v35, 0.0 }
 0x3bc   : > { %v2232_v39 = vpop.f32.mrf.mxu0 }
 0x3bd   : > { %v2233_v40 = vadd.f32 %v4350_v5, %v2232_v39  ;;  %v2490_v41 = vpack.c.bf16 %v2462_v38, %v2461_v36 }
 0x3bf   : > { %v2275_v42 = vmax.f32 %v2233_v40, 0.0  ;;  %2594 = vmatmul.bf16.gmra.mxu2 %v2490_v41 }
 0x3c0   : > { %v2395_v44 = vpop.f32.mrf.mxu1 }
 0x3c1   : > { %v2294_v45 = vpack.c.bf16 %v2275_v42, %v2274_v58  ;;  %v2396_v48 = vadd.f32 %v4422_v50, %v2395_v44  ;;  %v4471_v58 = vld [vmem:[%s4612_s14] ss:$0 sm:$0xff] }
 0x3c3   : > { %2434 = vmatmul.bf16.gmra.mxu1 %v2294_v45  ;;  %v2463_v52 = vmax.f32 %v2396_v48, 0.0 }
 0x3c4   : > { %v2235_v47 = vpop.f32.mrf.mxu0 }
 0x3c5   : > { %v2236_v53 = vadd.f32 %v4350_v5, %v2235_v47 }
 0x3c7   : > { %v2276_v57 = vmax.f32 %v2236_v53, 0.0 }
 0x3c8   : > { %v2397_v49 = vpop.f32.mrf.mxu1 }
 0x3c9   : > { %v2398_v51 = vadd.f32 %v4422_v50, %v2397_v49 }
 0x3cb   : > { %v2464_v54 = vmax.f32 %v2398_v51, 0.0 }
 0x3cc   : > { %v2237_v55 = vpop.f32.mrf.mxu0 }
 0x3cd   : > { %v2491_v43 = vpack.c.bf16 %v2464_v54, %v2463_v52  ;;  %v2238_v56 = vadd.f32 %v4350_v5, %v2237_v55 }
 0x3cf   : > { %v2277_v59 = vmax.f32 %v2238_v56, 0.0  ;;  %2599 = vmatmul.bf16.gmra.mxu2 %v2491_v43 }
 0x3d0   : > { %v2400_v60 = vpop.f32.mrf.mxu1 }
 0x3d1   : > { %v2295_v61 = vpack.c.bf16 %v2277_v59, %v2276_v57  ;;  %v2401_v63 = vadd.f32 %v4422_v50, %v2400_v60 }
 0x3d3   : > { %2439 = vmatmul.bf16.gmra.mxu1 %v2295_v61  ;;  %v2465_v24 = vmax.f32 %v2401_v63, 0.0 }
 0x3d4   : > { %v2240_v62 = vpop.f32.mrf.mxu0 }
 0x3d5   : > { %v2241_v2 = vadd.f32 %v4350_v5, %v2240_v62 }
 0x3d7   : > { %v2278_v8 = vmax.f32 %v2241_v2, 0.0 }
 0x3d8   : > { %v2402_v0 = vpop.f32.mrf.mxu1 }
 0x3d9   : > { %v2403_v1 = vadd.f32 %v4422_v50, %v2402_v0 }
 0x3db   : > { %v2466_v3 = vmax.f32 %v2403_v1, 0.0 }
 0x3dc   : > { %v2242_v4 = vpop.f32.mrf.mxu0 }
 0x3dd   : > { %v2492_v6 = vpack.c.bf16 %v2466_v3, %v2465_v24  ;;  %v2243_v7 = vadd.f32 %v4350_v5, %v2242_v4 }
 0x3df   : > { %v2279_v9 = vmax.f32 %v2243_v7, 0.0  ;;  %2604 = vmatmul.bf16.gmra.mxu2 %v2492_v6 }
 0x3e0   : > { %v2405_v10 = vpop.f32.mrf.mxu1 }
 0x3e1   : > { %v2296_v11 = vpack.c.bf16 %v2279_v9, %v2278_v8  ;;  %v2406_v14 = vadd.f32 %v4422_v50, %v2405_v10 }
 0x3e3   : > { %2444 = vmatmul.bf16.gmra.mxu1 %v2296_v11  ;;  %v2467_v17 = vmax.f32 %v2406_v14, 0.0 }
 0x3e4   : > { %v2245_v13 = vpop.f32.mrf.mxu0 }
 0x3e5   : > { %v2246_v18 = vadd.f32 %v4350_v5, %v2245_v13 }
 0x3e7   : > { %v2280_v23 = vmax.f32 %v2246_v18, 0.0 }
 0x3e8   : > { %v2407_v15 = vpop.f32.mrf.mxu1 }
 0x3e9   : > { %v2408_v16 = vadd.f32 %v4422_v50, %v2407_v15 }
 0x3eb   : > { %v2468_v20 = vmax.f32 %v2408_v16, 0.0 }
 0x3ec   : > { %v2247_v21 = vpop.f32.mrf.mxu0 }
 0x3ed   : > { %v2493_v19 = vpack.c.bf16 %v2468_v20, %v2467_v17  ;;  %v2248_v22 = vadd.f32 %v4350_v5, %v2247_v21 }
 0x3ef   : > { %v2281_v25 = vmax.f32 %v2248_v22, 0.0  ;;  %2609 = vmatmul.bf16.gmra.mxu2 %v2493_v19 }
 0x3f0   : > { %v2410_v26 = vpop.f32.mrf.mxu1 }
 0x3f1   : > { %v2297_v27 = vpack.c.bf16 %v2281_v25, %v2280_v23  ;;  %v2411_v28 = vadd.f32 %v4422_v50, %v2410_v26 }
 0x3f3   : > { %2449 = vmatmul.bf16.gmra.mxu1 %v2297_v27  ;;  %v2469_v31 = vmax.f32 %v2411_v28, 0.0 }
 0x3f8   : > { %v2412_v29 = vpop.f32.mrf.mxu1 }
 0x3f9   : > { %v2413_v30 = vadd.f32 %v4422_v50, %v2412_v29 }
 0x3fb   : > { %v2470_v32 = vmax.f32 %v2413_v30, 0.0 }
 0x3fd   : > { %v2494_v33 = vpack.c.bf16 %v2470_v32, %v2469_v31 }
 0x3ff   : > { %2614 = vmatmul.bf16.gmra.mxu2 %v2494_v33 }
 0x400   : > { %v2415_v34 = vpop.f32.mrf.mxu1 }
 0x401   : > { %v2416_v35 = vadd.f32 %v4422_v50, %v2415_v34 }
 0x403   : > { %v2471_v37 = vmax.f32 %v2416_v35, 0.0 }
 0x408   : > { %v2417_v36 = vpop.f32.mrf.mxu1 }
 0x409   : > { %v2418_v5 = vadd.f32 %v4422_v50, %v2417_v36 }
 0x40b   : > { %v2472_v38 = vmax.f32 %v2418_v5, 0.0 }
 0x40d   : > { %v2495_v39 = vpack.c.bf16 %v2472_v38, %v2471_v37 }
 0x40f   : > { %2619 = vmatmul.bf16.gmra.mxu2 %v2495_v39 }
 0x410   : > { %v2420_v40 = vpop.f32.mrf.mxu1 }
 0x411   : > { %v2421_v42 = vadd.f32 %v4422_v50, %v2420_v40 }
 0x412   : > { %v2580_v41 = vpop.f32.mrf.mxu2 }
 0x413   : > { %v2581_v45 = vadd.f32 %v4471_v58, %v2580_v41  ;;  %v2473_v48 = vmax.f32 %v2421_v42, 0.0 }
 0x415   : > { %v2660_v52 = vmax.f32 %v2581_v45, 0.0 }
 0x418   : > { %v2422_v44 = vpop.f32.mrf.mxu1 }
 0x419   : > { %v2423_v46 = vadd.f32 %v4422_v50, %v2422_v44 }
 0x41a   : > { %v2582_v47 = vpop.f32.mrf.mxu2 }
 0x41b   : > { %v2474_v49 = vmax.f32 %v2423_v46, 0.0  ;;  %v2583_v51 = vadd.f32 %v4471_v58, %v2582_v47 }
 0x41d   : > { %v2496_v53 = vpack.c.bf16 %v2474_v49, %v2473_v48  ;;  %v2661_v54 = vmax.f32 %v2583_v51, 0.0 }
 0x41f   : > { %v2692_v55 = vpack.c.bf16 %v2661_v54, %v2660_v52  ;;  %2624 = vmatmul.bf16.gmra.mxu2 %v2496_v53 }
 0x420   : > { %v2425_v43 = vpop.f32.mrf.mxu1 }
 0x421   : > { %2784 = vmatmul.bf16.vlgmr.msrb.gmra.mxu3 %v2692_v55  ;;  %v2426_v57 = vadd.f32 %v4422_v50, %v2425_v43 }
 0x422   : > { %v2585_v56 = vpop.f32.mrf.mxu2 }
 0x423   : > { %v2586_v60 = vadd.f32 %v4471_v58, %v2585_v56  ;;  %v2475_v63 = vmax.f32 %v2426_v57, 0.0 }
 0x425   : > { %v2662_v24 = vmax.f32 %v2586_v60, 0.0 }
 0x428   : > { %v2427_v59 = vpop.f32.mrf.mxu1 }
 0x429   : > { %v2428_v61 = vadd.f32 %v4422_v50, %v2427_v59 }
 0x42a   : > { %v2587_v62 = vpop.f32.mrf.mxu2 }
 0x42b   : > { %v2476_v0 = vmax.f32 %v2428_v61, 0.0  ;;  %v2588_v1 = vadd.f32 %v4471_v58, %v2587_v62 }
 0x42d   : > { %v2497_v2 = vpack.c.bf16 %v2476_v0, %v2475_v63  ;;  %v2663_v3 = vmax.f32 %v2588_v1, 0.0 }
 0x42f   : > { %2629 = vmatmul.bf16.gmra.mxu2 %v2497_v2  ;;  %v2693_v4 = vpack.c.bf16 %v2663_v3, %v2662_v24 }
 0x430   : > { %v2430_v6 = vpop.f32.mrf.mxu1 }
 0x431   : > { %2789 = vmatmul.bf16.gmra.mxu3 %v2693_v4  ;;  %v2431_v8 = vadd.f32 %v4422_v50, %v2430_v6 }
 0x432   : > { %v2590_v7 = vpop.f32.mrf.mxu2 }
 0x433   : > { %v2591_v10 = vadd.f32 %v4471_v58, %v2590_v7  ;;  %v2477_v13 = vmax.f32 %v2431_v8, 0.0 }
 0x435   : > { %v2664_v16 = vmax.f32 %v2591_v10, 0.0 }
 0x438   : > { %v2432_v9 = vpop.f32.mrf.mxu1 }
 0x439   : > { %v2433_v11 = vadd.f32 %v4422_v50, %v2432_v9 }
 0x43a   : > { %v2592_v12 = vpop.f32.mrf.mxu2 }
 0x43b   : > { %v2478_v14 = vmax.f32 %v2433_v11, 0.0  ;;  %v2593_v15 = vadd.f32 %v4471_v58, %v2592_v12 }
 0x43d   : > { %v2498_v17 = vpack.c.bf16 %v2478_v14, %v2477_v13  ;;  %v2665_v18 = vmax.f32 %v2593_v15, 0.0 }
 0x43f   : > { %2634 = vmatmul.bf16.gmra.mxu2 %v2498_v17  ;;  %v2694_v20 = vpack.c.bf16 %v2665_v18, %v2664_v16 }
 0x440   : > { %v2435_v21 = vpop.f32.mrf.mxu1 }
 0x441   : > { %2794 = vmatmul.bf16.gmra.mxu3 %v2694_v20  ;;  %v2436_v22 = vadd.f32 %v4422_v50, %v2435_v21 }
 0x442   : > { %v2595_v19 = vpop.f32.mrf.mxu2 }
 0x443   : > { %v2596_v25 = vadd.f32 %v4471_v58, %v2595_v19  ;;  %v2479_v28 = vmax.f32 %v2436_v22, 0.0 }
 0x445   : > { %v2666_v31 = vmax.f32 %v2596_v25, 0.0 }
 0x448   : > { %v2437_v23 = vpop.f32.mrf.mxu1 }
 0x449   : > { %v2438_v26 = vadd.f32 %v4422_v50, %v2437_v23 }
 0x44a   : > { %v2597_v27 = vpop.f32.mrf.mxu2 }
 0x44b   : > { %v2480_v29 = vmax.f32 %v2438_v26, 0.0  ;;  %v2598_v30 = vadd.f32 %v4471_v58, %v2597_v27 }
 0x44d   : > { %v2499_v32 = vpack.c.bf16 %v2480_v29, %v2479_v28  ;;  %v2667_v33 = vmax.f32 %v2598_v30, 0.0  ;;  %v4508_v28 = vld [vmem:[%s4614_s16] ss:$0 sm:$0xff] }
 0x44f   : > { %2639 = vmatmul.bf16.gmra.mxu2 %v2499_v32  ;;  %v2695_v34 = vpack.c.bf16 %v2667_v33, %v2666_v31 }
 0x450   : > { %v2440_v35 = vpop.f32.mrf.mxu1 }
 0x451   : > { %2799 = vmatmul.bf16.gmra.mxu3 %v2695_v34  ;;  %v2441_v5 = vadd.f32 %v4422_v50, %v2440_v35 }
 0x452   : > { %v2600_v36 = vpop.f32.mrf.mxu2 }
 0x453   : > { %v2601_v38 = vadd.f32 %v4471_v58, %v2600_v36  ;;  %v2481_v41 = vmax.f32 %v2441_v5, 0.0 }
 0x455   : > { %v2668_v45 = vmax.f32 %v2601_v38, 0.0 }
 0x458   : > { %v2442_v37 = vpop.f32.mrf.mxu1 }
 0x459   : > { %v2443_v39 = vadd.f32 %v4422_v50, %v2442_v37 }
 0x45a   : > { %v2602_v40 = vpop.f32.mrf.mxu2 }
 0x45b   : > { %v2482_v42 = vmax.f32 %v2443_v39, 0.0  ;;  %v2603_v44 = vadd.f32 %v4471_v58, %v2602_v40 }
 0x45d   : > { %v2500_v46 = vpack.c.bf16 %v2482_v42, %v2481_v41  ;;  %v2669_v47 = vmax.f32 %v2603_v44, 0.0 }
 0x45f   : > { %v2696_v48 = vpack.c.bf16 %v2669_v47, %v2668_v45  ;;  %2644 = vmatmul.bf16.gmra.mxu2 %v2500_v46 }
 0x460   : > { %v2445_v49 = vpop.f32.mrf.mxu1 }
 0x461   : > { %2804 = vmatmul.bf16.gmra.mxu3 %v2696_v48  ;;  %v2446_v52 = vadd.f32 %v4422_v50, %v2445_v49 }
 0x462   : > { %v2605_v51 = vpop.f32.mrf.mxu2 }
 0x463   : > { %v2606_v54 = vadd.f32 %v4471_v58, %v2605_v51  ;;  %v2483_v56 = vmax.f32 %v2446_v52, 0.0 }
 0x465   : > { %v2670_v60 = vmax.f32 %v2606_v54, 0.0 }
 0x468   : > { %v2447_v53 = vpop.f32.mrf.mxu1 }
 0x469   : > { %v2448_v55 = vadd.f32 %v4422_v50, %v2447_v53 }
 0x46a   : > { %v2607_v43 = vpop.f32.mrf.mxu2 }
 0x46b   : > { %v2484_v57 = vmax.f32 %v2448_v55, 0.0  ;;  %v2608_v59 = vadd.f32 %v4471_v58, %v2607_v43 }
 0x46d   : > { %v2501_v61 = vpack.c.bf16 %v2484_v57, %v2483_v56  ;;  %v2671_v62 = vmax.f32 %v2608_v59, 0.0 }
 0x46f   : > { %v2697_v63 = vpack.c.bf16 %v2671_v62, %v2670_v60  ;;  %2649 = vmatmul.bf16.gmra.mxu2 %v2501_v61 }
 0x470   : > { %v2450_v0 = vpop.f32.mrf.mxu1 }
 0x471   : > { %2809 = vmatmul.bf16.gmra.mxu3 %v2697_v63  ;;  %v2451_v24 = vadd.f32 %v4422_v50, %v2450_v0 }
 0x472   : > { %v2610_v1 = vpop.f32.mrf.mxu2 }
 0x473   : > { %v2611_v3 = vadd.f32 %v4471_v58, %v2610_v1  ;;  %v2485_v7 = vmax.f32 %v2451_v24, 0.0 }
 0x475   : > { %v2672_v10 = vmax.f32 %v2611_v3, 0.0 }
 0x478   : > { %v2452_v2 = vpop.f32.mrf.mxu1 }
 0x479   : > { %v2453_v4 = vadd.f32 %v4422_v50, %v2452_v2 }
 0x47a   : > { %v2612_v6 = vpop.f32.mrf.mxu2 }
 0x47b   : > { %v2486_v8 = vmax.f32 %v2453_v4, 0.0  ;;  %v2613_v9 = vadd.f32 %v4471_v58, %v2612_v6 }
 0x47d   : > { %v2502_v11 = vpack.c.bf16 %v2486_v8, %v2485_v7  ;;  %v2673_v12 = vmax.f32 %v2613_v9, 0.0 }
 0x47f   : > { %v2698_v13 = vpack.c.bf16 %v2673_v12, %v2672_v10  ;;  %2654 = vmatmul.bf16.gmra.mxu2 %v2502_v11 }
 0x481   : > { %2814 = vmatmul.bf16.gmra.mxu3 %v2698_v13 }
 0x482   : > { %v2615_v14 = vpop.f32.mrf.mxu2 }
 0x483   : > { %v2616_v15 = vadd.f32 %v4471_v58, %v2615_v14 }
 0x485   : > { %v2674_v18 = vmax.f32 %v2616_v15, 0.0 }
 0x48a   : > { %v2617_v16 = vpop.f32.mrf.mxu2 }
 0x48b   : > { %v2618_v17 = vadd.f32 %v4471_v58, %v2617_v16 }
 0x48d   : > { %v2675_v50 = vmax.f32 %v2618_v17, 0.0 }
 0x48f   : > { %v2699_v20 = vpack.c.bf16 %v2675_v50, %v2674_v18 }
 0x491   : > { %2819 = vmatmul.bf16.gmra.mxu3 %v2699_v20 }
 0x492   : > { %v2620_v21 = vpop.f32.mrf.mxu2 }
 0x493   : > { %v2621_v19 = vadd.f32 %v4471_v58, %v2620_v21 }
 0x495   : > { %v2676_v25 = vmax.f32 %v2621_v19, 0.0 }
 0x49a   : > { %v2622_v22 = vpop.f32.mrf.mxu2 }
 0x49b   : > { %v2623_v23 = vadd.f32 %v4471_v58, %v2622_v22 }
 0x49d   : > { %v2677_v26 = vmax.f32 %v2623_v23, 0.0 }
 0x49f   : > { %v2700_v27 = vpack.c.bf16 %v2677_v26, %v2676_v25 }
 0x4a1   : > { %2824 = vmatmul.bf16.gmra.mxu3 %v2700_v27 }
 0x4a2   : > { %v2625_v29 = vpop.f32.mrf.mxu2 }
 0x4a3   : > { %v2626_v32 = vadd.f32 %v4471_v58, %v2625_v29 }
 0x4a4   : > { %v2785_v30 = vpop.f32.mrf.mxu3 }
 0x4a5   : > { %v2786_v31 = vadd.f32 %v4508_v28, %v2785_v30  ;;  %v2678_v36 = vmax.f32 %v2626_v32, 0.0 }
 0x4a7   : > { %2865 = vst [vmem:[%s4515_s23] sm:$0xff] %v2786_v31 }
 0x4aa   : > { %v2627_v33 = vpop.f32.mrf.mxu2 }
 0x4ab   : > { %v2628_v34 = vadd.f32 %v4471_v58, %v2627_v33 }
 0x4ac   : > { %v2787_v35 = vpop.f32.mrf.mxu3 }
 0x4ad   : > { %v2679_v5 = vmax.f32 %v2628_v34, 0.0  ;;  %v2788_v37 = vadd.f32 %v4508_v28, %v2787_v35 }
 0x4af   : > { %v2701_v38 = vpack.c.bf16 %v2679_v5, %v2678_v36  ;;  %2866 = vst [vmem:[%s4515_s23 + $0x8] sm:$0xff] %v2788_v37 }
 0x4b1   : > { %2829 = vmatmul.bf16.gmra.mxu3 %v2701_v38 }
 0x4b2   : > { %v2630_v39 = vpop.f32.mrf.mxu2 }
 0x4b3   : > { %v2631_v42 = vadd.f32 %v4471_v58, %v2630_v39 }
 0x4b4   : > { %v2790_v40 = vpop.f32.mrf.mxu3 }
 0x4b5   : > { %v2791_v41 = vadd.f32 %v4508_v28, %v2790_v40  ;;  %v2680_v47 = vmax.f32 %v2631_v42, 0.0 }
 0x4b7   : > { %2867 = vst [vmem:[%s4515_s23 + $0x10] sm:$0xff] %v2791_v41 }
 0x4ba   : > { %v2632_v44 = vpop.f32.mrf.mxu2 }
 0x4bb   : > { %v2633_v45 = vadd.f32 %v4471_v58, %v2632_v44 }
 0x4bc   : > { %v2792_v46 = vpop.f32.mrf.mxu3 }
 0x4bd   : > { %v2681_v48 = vmax.f32 %v2633_v45, 0.0  ;;  %v2793_v49 = vadd.f32 %v4508_v28, %v2792_v46 }
 0x4bf   : > { %v2702_v51 = vpack.c.bf16 %v2681_v48, %v2680_v47  ;;  %2868 = vst [vmem:[%s4515_s23 + $0x18] sm:$0xff] %v2793_v49 }
 0x4c1   : > { %2834 = vmatmul.bf16.gmra.mxu3 %v2702_v51 }
 0x4c2   : > { %v2635_v52 = vpop.f32.mrf.mxu2 }
 0x4c3   : > { %v2636_v55 = vadd.f32 %v4471_v58, %v2635_v52 }
 0x4c4   : > { %v2795_v53 = vpop.f32.mrf.mxu3 }
 0x4c5   : > { %v2796_v54 = vadd.f32 %v4508_v28, %v2795_v53  ;;  %v2682_v59 = vmax.f32 %v2636_v55, 0.0 }
 0x4c7   : > { %2869 = vst [vmem:[%s4515_s23 + $0x20] sm:$0xff] %v2796_v54 }
 0x4ca   : > { %v2637_v43 = vpop.f32.mrf.mxu2 }
 0x4cb   : > { %v2638_v56 = vadd.f32 %v4471_v58, %v2637_v43 }
 0x4cc   : > { %v2797_v57 = vpop.f32.mrf.mxu3 }
 0x4cd   : > { %v2683_v60 = vmax.f32 %v2638_v56, 0.0  ;;  %v2798_v61 = vadd.f32 %v4508_v28, %v2797_v57 }
 0x4cf   : > { %v2703_v62 = vpack.c.bf16 %v2683_v60, %v2682_v59  ;;  %2870 = vst [vmem:[%s4515_s23 + $0x28] sm:$0xff] %v2798_v61 }
 0x4d1   : > { %2839 = vmatmul.bf16.gmra.mxu3 %v2703_v62 }
 0x4d2   : > { %v2640_v63 = vpop.f32.mrf.mxu2 }
 0x4d3   : > { %v2641_v24 = vadd.f32 %v4471_v58, %v2640_v63 }
 0x4d4   : > { %v2800_v0 = vpop.f32.mrf.mxu3 }
 0x4d5   : > { %v2801_v1 = vadd.f32 %v4508_v28, %v2800_v0  ;;  %v2684_v6 = vmax.f32 %v2641_v24, 0.0 }
 0x4d7   : > { %2871 = vst [vmem:[%s4515_s23 + $0x30] sm:$0xff] %v2801_v1 }
 0x4da   : > { %v2642_v2 = vpop.f32.mrf.mxu2 }
 0x4db   : > { %v2643_v3 = vadd.f32 %v4471_v58, %v2642_v2 }
 0x4dc   : > { %v2802_v4 = vpop.f32.mrf.mxu3 }
 0x4dd   : > { %v2685_v7 = vmax.f32 %v2643_v3, 0.0  ;;  %v2803_v8 = vadd.f32 %v4508_v28, %v2802_v4 }
 0x4df   : > { %v2704_v9 = vpack.c.bf16 %v2685_v7, %v2684_v6  ;;  %2872 = vst [vmem:[%s4515_s23 + $0x38] sm:$0xff] %v2803_v8 }
 0x4e1   : > { %2844 = vmatmul.bf16.gmra.mxu3 %v2704_v9 }
 0x4e2   : > { %v2645_v10 = vpop.f32.mrf.mxu2 }
 0x4e3   : > { %v2646_v13 = vadd.f32 %v4471_v58, %v2645_v10 }
 0x4e4   : > { %v2805_v11 = vpop.f32.mrf.mxu3 }
 0x4e5   : > { %v2806_v12 = vadd.f32 %v4508_v28, %v2805_v11  ;;  %v2686_v17 = vmax.f32 %v2646_v13, 0.0 }
 0x4e7   : > { %2873 = vst [vmem:[%s4515_s23 + $0x40] sm:$0xff] %v2806_v12 }
 0x4ea   : > { %v2647_v14 = vpop.f32.mrf.mxu2 }
 0x4eb   : > { %v2648_v15 = vadd.f32 %v4471_v58, %v2647_v14 }
 0x4ec   : > { %v2807_v16 = vpop.f32.mrf.mxu3 }
 0x4ed   : > { %v2687_v18 = vmax.f32 %v2648_v15, 0.0  ;;  %v2808_v50 = vadd.f32 %v4508_v28, %v2807_v16 }
 0x4ef   : > { %v2705_v20 = vpack.c.bf16 %v2687_v18, %v2686_v17  ;;  %2874 = vst [vmem:[%s4515_s23 + $0x48] sm:$0xff] %v2808_v50 }
 0x4f1   : > { %2849 = vmatmul.bf16.gmra.mxu3 %v2705_v20 }
 0x4f2   : > { %v2650_v21 = vpop.f32.mrf.mxu2 }
 0x4f3   : > { %v2651_v23 = vadd.f32 %v4471_v58, %v2650_v21 }
 0x4f4   : > { %v2810_v19 = vpop.f32.mrf.mxu3 }
 0x4f5   : > { %v2811_v22 = vadd.f32 %v4508_v28, %v2810_v19  ;;  %v2688_v29 = vmax.f32 %v2651_v23, 0.0 }
 0x4f7   : > { %2875 = vst [vmem:[%s4515_s23 + $0x50] sm:$0xff] %v2811_v22 }
 0x4fa   : > { %v2652_v25 = vpop.f32.mrf.mxu2 }
 0x4fb   : > { %v2653_v26 = vadd.f32 %v4471_v58, %v2652_v25 }
 0x4fc   : > { %v2812_v27 = vpop.f32.mrf.mxu3 }
 0x4fd   : > { %v2689_v30 = vmax.f32 %v2653_v26, 0.0  ;;  %v2813_v31 = vadd.f32 %v4508_v28, %v2812_v27 }
 0x4ff   : > { %v2706_v32 = vpack.c.bf16 %v2689_v30, %v2688_v29  ;;  %2876 = vst [vmem:[%s4515_s23 + $0x58] sm:$0xff] %v2813_v31 }
 0x501   : > { %2854 = vmatmul.bf16.gmra.mxu3 %v2706_v32 }
 0x502   : > { %v2655_v33 = vpop.f32.mrf.mxu2 }
 0x503   : > { %v2656_v36 = vadd.f32 %v4471_v58, %v2655_v33 }
 0x504   : > { %v2815_v34 = vpop.f32.mrf.mxu3 }
 0x505   : > { %v2816_v35 = vadd.f32 %v4508_v28, %v2815_v34  ;;  %v2690_v39 = vmax.f32 %v2656_v36, 0.0 }
 0x507   : > { %2877 = vst [vmem:[%s4515_s23 + $0x60] sm:$0xff] %v2816_v35 }
 0x50a   : > { %v2657_v5 = vpop.f32.mrf.mxu2 }
 0x50b   : > { %v2658_v37 = vadd.f32 %v4471_v58, %v2657_v5 }
 0x50c   : > { %v2817_v38 = vpop.f32.mrf.mxu3 }
 0x50d   : > { %v2691_v40 = vmax.f32 %v2658_v37, 0.0  ;;  %v2818_v41 = vadd.f32 %v4508_v28, %v2817_v38 }
 0x50f   : > { %v2707_v42 = vpack.c.bf16 %v2691_v40, %v2690_v39  ;;  %2878 = vst [vmem:[%s4515_s23 + $0x68] sm:$0xff] %v2818_v41 }
 0x511   : > { %2859 = vmatmul.bf16.gmra.mxu3 %v2707_v42 }
 0x514   : > { %v2820_v44 = vpop.f32.mrf.mxu3 }
 0x515   : > { %v2821_v45 = vadd.f32 %v4508_v28, %v2820_v44 }
 0x517   : > { %2879 = vst [vmem:[%s4515_s23 + $0x70] sm:$0xff] %v2821_v45 }
 0x51c   : > { %v2822_v46 = vpop.f32.mrf.mxu3 }
 0x51d   : > { %v2823_v47 = vadd.f32 %v4508_v28, %v2822_v46 }
 0x51f   : > { %2880 = vst [vmem:[%s4515_s23 + $0x78] sm:$0xff] %v2823_v47 }
 0x524   : > { %v2825_v58 = vpop.f32.mrf.mxu3 }
 0x525   : > { %v2826_v48 = vadd.f32 %v4508_v28, %v2825_v58 }
 0x527   : > { %2881 = vst [vmem:[%s4515_s23 + $0x80] sm:$0xff] %v2826_v48 }
 0x52c   : > { %v2827_v49 = vpop.f32.mrf.mxu3 }
 0x52d   : > { %v2828_v51 = vadd.f32 %v4508_v28, %v2827_v49 }
 0x52f   : > { %2882 = vst [vmem:[%s4515_s23 + $0x88] sm:$0xff] %v2828_v51 }
 0x534   : > { %v2830_v52 = vpop.f32.mrf.mxu3 }
 0x535   : > { %v2831_v53 = vadd.f32 %v4508_v28, %v2830_v52 }
 0x537   : > { %2883 = vst [vmem:[%s4515_s23 + $0x90] sm:$0xff] %v2831_v53 }
 0x53c   : > { %v2832_v54 = vpop.f32.mrf.mxu3 }
 0x53d   : > { %v2833_v55 = vadd.f32 %v4508_v28, %v2832_v54 }
 0x53f   : > { %2884 = vst [vmem:[%s4515_s23 + $0x98] sm:$0xff] %v2833_v55 }
 0x544   : > { %v2835_v43 = vpop.f32.mrf.mxu3 }
 0x545   : > { %v2836_v56 = vadd.f32 %v4508_v28, %v2835_v43 }
 0x547   : > { %2885 = vst [vmem:[%s4515_s23 + $0xa0] sm:$0xff] %v2836_v56 }
 0x54c   : > { %v2837_v57 = vpop.f32.mrf.mxu3 }
 0x54d   : > { %v2838_v59 = vadd.f32 %v4508_v28, %v2837_v57 }
 0x54f   : > { %2886 = vst [vmem:[%s4515_s23 + $0xa8] sm:$0xff] %v2838_v59 }
 0x554   : > { %v2840_v60 = vpop.f32.mrf.mxu3 }
 0x555   : > { %v2841_v61 = vadd.f32 %v4508_v28, %v2840_v60 }
 0x557   : > { %2887 = vst [vmem:[%s4515_s23 + $0xb0] sm:$0xff] %v2841_v61 }
 0x55c   : > { %v2842_v62 = vpop.f32.mrf.mxu3 }
 0x55d   : > { %v2843_v63 = vadd.f32 %v4508_v28, %v2842_v62 }
 0x55f   : > { %2888 = vst [vmem:[%s4515_s23 + $0xb8] sm:$0xff] %v2843_v63 }
 0x564   : > { %v2845_v0 = vpop.f32.mrf.mxu3 }
 0x565   : > { %v2846_v1 = vadd.f32 %v4508_v28, %v2845_v0 }
 0x567   : > { %2889 = vst [vmem:[%s4515_s23 + $0xc0] sm:$0xff] %v2846_v1 }
 0x56c   : > { %v2847_v24 = vpop.f32.mrf.mxu3 }
 0x56d   : > { %v2848_v2 = vadd.f32 %v4508_v28, %v2847_v24 }
 0x56f   : > { %2890 = vst [vmem:[%s4515_s23 + $0xc8] sm:$0xff] %v2848_v2 }
 0x574   : > { %v2850_v3 = vpop.f32.mrf.mxu3 }
 0x575   : > { %v2851_v4 = vadd.f32 %v4508_v28, %v2850_v3 }
 0x577   : > { %2891 = vst [vmem:[%s4515_s23 + $0xd0] sm:$0xff] %v2851_v4 }
 0x57c   : > { %v2852_v6 = vpop.f32.mrf.mxu3 }
 0x57d   : > { %v2853_v7 = vadd.f32 %v4508_v28, %v2852_v6 }
 0x57f   : > { %2892 = vst [vmem:[%s4515_s23 + $0xd8] sm:$0xff] %v2853_v7 }
 0x584   : > { %v2855_v8 = vpop.f32.mrf.mxu3 }
 0x585   : > { %v2856_v9 = vadd.f32 %v4508_v28, %v2855_v8 }
 0x587   : > { %2893 = vst [vmem:[%s4515_s23 + $0xe0] sm:$0xff] %v2856_v9 }
 0x58c   : > { %v2857_v10 = vpop.f32.mrf.mxu3 }
 0x58d   : > { %v2858_v11 = vadd.f32 %v4508_v28, %v2857_v10 }
 0x58f   : > { %2894 = vst [vmem:[%s4515_s23 + $0xe8] sm:$0xff] %v2858_v11 }
 0x594   : > { %v2860_v12 = vpop.f32.mrf.mxu3 }
 0x595   : > { %v2861_v13 = vadd.f32 %v4508_v28, %v2860_v12 }
 0x597   : > { %2895 = vst [vmem:[%s4515_s23 + $0xf0] sm:$0xff] %v2861_v13 }
 0x59c   : > { %v2862_v14 = vpop.f32.mrf.mxu3 }
 0x59d   : > { %v2863_v15 = vadd.f32 %v4508_v28, %v2862_v14 }
 0x59f   : > { %2896 = vst [vmem:[%s4515_s23 + $0xf8] sm:$0xff] %v2863_v15 }
 0x5a0 PF: > { %s32_s2 = sadd.s32 1, %s3815_s2  }
 0x5a1   : > { %p29_p4 = scmp.ge.s32.totalorder %s32_s2, 4  }
 0x5a3   :  { %31 = sbr.rel (!%p29_p4) target bundleno = 7 (0x7), region = 166 }

</bundles_post_ra>
